<compile_context>
chip_gen: v5e
topology: v5e:2x2
jax: 0.10.0
libtpu: 0.0.40
codegen_flags: <defaults>
</compile_context>

<pallas_src>
import jax
import jax.numpy as jnp
from jax import lax
from jax.experimental import pallas as pl
from jax.experimental.pallas import tpu as pltpu


def _round_up(x: int, m: int) -> int:
    return (x + m - 1) // m * m


def decoder1x1_kernel(x_ref, w_ref, b_ref, o_ref):
    # x_ref: (Cin, THW)    current batch element's spatial tile (lane = THW)
    # w_ref: (Cout, Cin)   BN-folded 1x1-conv weight
    # b_ref: (Cout, 1)     BN-folded per-channel bias
    # o_ref: (Cout, THW)
    x = x_ref[...]
    w = w_ref[...]
    # Contract W's Cin (axis 1) with x's Cin (axis 0) -> (Cout, THW),
    # f32 accumulation on the MXU, no transposes materialized.
    y = lax.dot_general(
        w, x,
        dimension_numbers=(((1,), (0,)), ((), ())),
        preferred_element_type=jnp.float32,
    )
    y = y + b_ref[...].astype(jnp.float32)          # broadcast (Cout,1) over lanes
    o_ref[...] = jnp.maximum(y, 0.0).astype(o_ref.dtype)


def decoder_forward(x, conv_w, gamma, beta, mean, var, *, eps=1e-5, tile_hw=512):
    """ReLU(BN(Conv1x1(x))) with BN folded into the conv (inference mode).

    x:      (N, Cin, H, W)
    conv_w: (Cout, Cin, 1, 1)
    gamma, beta, mean, var: (Cout,)
    """
    n, cin, h, w = x.shape
    cout = conv_w.shape[0]
    hw = h * w

    # ---- fold BatchNorm into the 1x1 conv (wrapper-side, O(Cout*Cin)) ----
    inv_std = lax.rsqrt(var.astype(jnp.float32) + eps)                 # (Cout,)
    scale = gamma.astype(jnp.float32) * inv_std                        # (Cout,)
    w_eff = (scale[:, None] * conv_w.reshape(cout, cin).astype(jnp.float32)
             ).astype(x.dtype)                                         # (Cout, Cin)
    b_eff = (beta.astype(jnp.float32)
             - mean.astype(jnp.float32) * scale)[:, None]              # (Cout, 1)

    # ---- lane-dense spatial tiling: pad HW up to a multiple of the tile ----
    tile = min(tile_hw, _round_up(hw, 128))
    hw_pad = _round_up(hw, tile)
    x_flat = x.reshape(n, cin, hw)
    if hw_pad != hw:
        x_flat = jnp.pad(x_flat, ((0, 0), (0, 0), (0, hw_pad - hw)))

    grid = (n, hw_pad // tile)

    out = pl.pallas_call(
        decoder1x1_kernel,
        out_shape=jax.ShapeDtypeStruct((n, cout, hw_pad), x.dtype),
        grid_spec=pltpu.PrefetchScalarGridSpec(
            num_scalar_prefetch=0,
            grid=grid,
            in_specs=[
                # per (batch, spatial-tile) slab of the input, batch squeezed
                pl.BlockSpec((None, cin, tile), lambda i, j: (i, 0, j)),
                # BN-folded weight / bias are resident across the whole grid
                pl.BlockSpec((cout, cin), lambda i, j: (0, 0)),
                pl.BlockSpec((cout, 1), lambda i, j: (0, 0)),
            ],
            out_specs=pl.BlockSpec((None, cout, tile), lambda i, j: (i, 0, j)),
        ),
        compiler_params=pltpu.CompilerParams(
            # both grid axes are independent -> shard across cores on v7x
            dimension_semantics=("parallel", "parallel"),
            # explicit cap with headroom for 2x double-buffered slabs;
            # <= 48 MiB keeps it safe on v7x's 64 MiB physical VMEM.
            vmem_limit_bytes=48 * 1024 * 1024,
        ),
    )(x_flat, w_eff, b_eff)

    return out[:, :, :hw].reshape(n, cout, h, w)


def decoder_reference(x, conv_w, gamma, beta, mean, var, *, eps=1e-5):
    """Pure-JAX reference mirroring the PyTorch forward (inference-mode BN)."""
    y = lax.conv_general_dilated(
        x, conv_w, window_strides=(1, 1), padding="VALID",
        dimension_numbers=("NCHW", "OIHW", "NCHW"))
    scale = gamma * lax.rsqrt(var + eps)
    y = (y - mean[None, :, None, None]) * scale[None, :, None, None] \
        + beta[None, :, None, None]
    return jnp.maximum(y, 0.0)


if __name__ == "__main__":
    # Small-but-faithful config: the module fixes Cin=512 -> Cout=256; use a
    # small 16x16 spatial map and batch 2 (x is ~1 MiB).
    n, cin, cout, h, w = 2, 512, 256, 16, 16

    key = jax.random.PRNGKey(0)
    kx, kw, kg, kb, km, kv = jax.random.split(key, 6)

    x = jax.random.normal(kx, (n, cin, h, w), dtype=jnp.float32)
    conv_w = jax.random.normal(kw, (cout, cin, 1, 1), dtype=jnp.float32) * (
        1.0 / jnp.sqrt(jnp.float32(cin)))
    gamma = jax.random.uniform(kg, (cout,), minval=0.5, maxval=1.5,
                               dtype=jnp.float32)
    beta = 0.1 * jax.random.normal(kb, (cout,), dtype=jnp.float32)
    mean = 0.1 * jax.random.normal(km, (cout,), dtype=jnp.float32)
    var = jax.random.uniform(kv, (cout,), minval=0.5, maxval=1.5,
                             dtype=jnp.float32)

    out = decoder_forward(x, conv_w, gamma, beta, mean, var)
    out = jax.block_until_ready(out)

    ref = decoder_reference(x, conv_w, gamma, beta, mean, var)
    if not bool(jnp.allclose(out, ref, atol=2e-3, rtol=2e-3)):
        raise AssertionError("Pallas kernel output mismatch vs JAX reference")

    print("KERNEL_OK")
</pallas_src>

<mosaic_0001>
module attributes {stable_mosaic.version = 11 : i64} {
  func.func @decoder1x1_kernel(%arg0: i32, %arg1: i32, %arg2: memref<1x512x256xf32, #tpu.memory_space<vmem>>, %arg3: memref<256x512xf32, #tpu.memory_space<vmem>>, %arg4: memref<256x1xf32, #tpu.memory_space<vmem>>, %arg5: memref<1x256x256xf32, #tpu.memory_space<vmem>>) attributes {dimension_semantics = [#tpu.dimension_semantics<parallel>, #tpu.dimension_semantics<parallel>], iteration_bounds = array<i64: 2, 1>, scalar_prefetch = 0 : i64, scratch_operands = 0 : i64, tpu.core_type = #tpu.core_type<tc>, window_params = [{transform_indices = @transform_0, window_bounds = array<i64: 1, 512, 256>}, {pipeline_mode = #tpu.pipeline_mode<synchronous>, transform_indices = @transform_1, window_bounds = array<i64: 256, 512>}, {pipeline_mode = #tpu.pipeline_mode<synchronous>, transform_indices = @transform_2, window_bounds = array<i64: 256, 1>}, {transform_indices = @transform_3, window_bounds = array<i64: 1, 256, 256>}]} {
    %c0 = arith.constant 0 : index
    %c0_0 = arith.constant 0 : index
    %c0_1 = arith.constant 0 : index
    %0 = vector.load %arg2[%c0, %c0_0, %c0_1] : memref<1x512x256xf32, #tpu.memory_space<vmem>>, vector<1x512x256xf32>
    %1 = vector.shape_cast %0 : vector<1x512x256xf32> to vector<512x256xf32>
    %c0_2 = arith.constant 0 : index
    %c0_3 = arith.constant 0 : index
    %2 = vector.load %arg3[%c0_2, %c0_3] : memref<256x512xf32, #tpu.memory_space<vmem>>, vector<256x512xf32>
    %cst = arith.constant dense<0.000000e+00> : vector<256x256xf32>
    %3 = tpu.matmul %2, %1, %cst {dimension_numbers = #tpu.dot_dimension_numbers<[1], [0], [0], [1], [0, 0, 1, 1], [], []>} : vector<256x512xf32>, vector<512x256xf32>, vector<256x256xf32> -> vector<256x256xf32>
    %c0_4 = arith.constant 0 : index
    %c0_5 = arith.constant 0 : index
    %4 = vector.load %arg4[%c0_4, %c0_5] : memref<256x1xf32, #tpu.memory_space<vmem>>, vector<256x1xf32>
    %5 = vector.broadcast %4 : vector<256x1xf32> to vector<256x256xf32>
    %6 = arith.addf %3, %5 : vector<256x256xf32>
    %cst_6 = arith.constant 0.000000e+00 : f32
    %7 = vector.broadcast %cst_6 : f32 to vector<256x256xf32>
    %8 = arith.maximumf %6, %7 : vector<256x256xf32>
    %c0_7 = arith.constant 0 : index
    %c0_8 = arith.constant 0 : index
    %c0_9 = arith.constant 0 : index
    %9 = vector.load %arg5[%c0_7, %c0_8, %c0_9] : memref<1x256x256xf32, #tpu.memory_space<vmem>>, vector<1x256x256xf32>
    %10 = vector.shape_cast %9 : vector<1x256x256xf32> to vector<256x256xf32>
    %11 = vector.shape_cast %8 : vector<256x256xf32> to vector<1x256x256xf32>
    tpu.vector_store %arg5[%c0_7, %c0_8, %c0_9], %11 {strides = array<i32>} : memref<1x256x256xf32, #tpu.memory_space<vmem>>, vector<1x256x256xf32>,
    return
  }
  func.func @transform_0(%arg0: i32, %arg1: i32) -> (i32, i32, i32) {
    %c0_i32 = arith.constant 0 : i32
    %c0_i32_0 = arith.constant 0 : i32
    return %arg0, %c0_i32, %arg1 : i32, i32, i32
  }
  func.func @transform_1(%arg0: i32, %arg1: i32) -> (i32, i32) {
    %c0_i32 = arith.constant 0 : i32
    %c0_i32_0 = arith.constant 0 : i32
    %c0_i32_1 = arith.constant 0 : i32
    return %c0_i32, %c0_i32_0 : i32, i32
  }
  func.func @transform_2(%arg0: i32, %arg1: i32) -> (i32, i32) {
    %c0_i32 = arith.constant 0 : i32
    %c0_i32_0 = arith.constant 0 : i32
    %c0_i32_1 = arith.constant 0 : i32
    return %c0_i32, %c0_i32_0 : i32, i32
  }
  func.func @transform_3(%arg0: i32, %arg1: i32) -> (i32, i32, i32) {
    %c0_i32 = arith.constant 0 : i32
    %c0_i32_0 = arith.constant 0 : i32
    return %arg0, %c0_i32, %arg1 : i32, i32, i32
  }
}

</mosaic_0001>

<bundles_post_ra>
// kernel: tpu_custom_call.1
= control target key start
LH: loop header
LB: loop body
LE: loop exit
PB: predicated region body
PF: predicated region fallthrough
CT: control target
= control target key end

     0   :  { %s2866_s0 = inlined_call_operand.hbm [shape: f32[2,512,256], index: 0, kind: input, shape index: {}]   ;;  %s2867_s1 = inlined_call_operand.hbm [shape: f32[256,512], index: 1, kind: input, shape index: {}]   ;;  %s2868_s2 = inlined_call_operand.vmem [shape: f32[256,1], index: 2, kind: input, shape index: {}]   ;;  %s2869_s3 = inlined_call_operand.hbm [shape: f32[2,256,256], index: 3, kind: output, shape index: {}]  }
   0x1   :  { %2876 = sst [smem:[#allocation17_spill]] %s2867_s1 }
   0x2   :  { %8 = vsyncpa [#allocation3], 0 }
   0x3   :  { %10 = vsyncpa [#allocation3 + $0x1], 0 }
   0x4   :  { %11 = vsyncpa [#allocation6], 0 }
   0x5   :  { %12 = vsyncpa [#allocation4], 0 }
   0x6   :  { %14 = vsyncpa [#allocation4 + $0x1], 0  ;;  %s2207_s12 = smov 0   ;;  %s2209_s13 = smov 0  }
   0x7   :  { %s2211_s14 = smov 0   ;;  %s2213_s15 = smov 0  }
   0x8   :  { %s2215_s16 = smov 0   ;;  %s2217_s17 = smov 0  }
   0x9 LB: > { %s1823_s18 = sadd.s32 4294967295, %s2177_s17   ;;  %s1824_s19 = sadd.s32 4294967294, %s2177_s17   ;;  %s2177_s17 = sphi %s2217_s17, %s20_s17   ;;  %s2173_s16 = sphi %s2215_s16, %s2901_s16   ;;  %s2169_s15 = sphi %s2213_s15, %s2900_s15   ;;  %s2165_s14 = sphi %s2211_s14, %s2899_s14   ;;  %s2161_s13 = sphi %s2209_s13, %s2898_s13   ;;  %s2157_s12 = sphi %s2207_s12, %s2897_s12  }
   0xa   : > { %p54_p0 = scmp.ne.s32.totalorder %s2161_s13, %s2157_s12  ;;  %p2241_p1 = scmp.eq.s32.totalorder %s1823_s18, 0 }
   0xb   : > { %p2245_p2 = scmp.eq.s32.totalorder %s1823_s18, 1  ;;  %p128_p3 = scmp.eq.s32.totalorder %s1824_s19, 1 }
   0xc   : > { %p2251_p4 = por %p2241_p1, %p54_p0  ;;  %p1825_p5 = scmp.ge.s32.totalorder %s2177_s17, 1 }
   0xd   : > { %p2256_p6 = por %p128_p3, %p54_p0  ;;  %p135_p7 = scmp.lt.s32.totalorder %s2177_s17, 3 }
   0xe   : > { %s2881_s1 = sld [smem:[#allocation17_spill]]  ;;  %s2179_s28 = smov [#allocation5]  }
   0xf   : > { %p2264_p8 = pnand %p1825_p5, %p135_p7  ;;  %s148_s29 = sshll.u32 %s2179_s28, 4  ;;  %s149_s29 = int_to_ptr.vmem [resolvable:$true] %s148_s29 }
  0x10   : > { %p1827_p11 = scmp.ge.s32.totalorder %s2177_s17, 2  ;;  %s2180_s30 = smov 512  }
  0x11   : > { %p1850_p9 = pneg %p2264_p8  ;;  %s2181_s4 = smov 32  }
  0x12   : > { %s32_s5 = sadd.s32 1, %s2173_s16  ;;  %s41_s6 = sadd.s32 1, %s2165_s14 }
  0x13   : > { %p1851_p10 = pnand %p1850_p9, %p2241_p1  ;;  %p34_p12 = scmp.ge.s32.totalorder %s32_s5, 2 }
  0x14   : > { %s146_s26 = sshll.u32 %s2881_s1, 4  ;;  %p48_p13 = scmp.ne.s32.totalorder %s2165_s14, %s2161_s13  ;;  %s147_s26 = int_to_ptr.hbm [resolvable:$true] %s146_s26 }
  0x15   : > { %1853 = dma.hbm_to_vmem [thread:$0]  (!%p1851_p10), %s147_s26, 16384, %s149_s29, [#allocation6], %s2180_s30, %s2180_s30, %s2181_s4  }
  0x16   : > { %p49_p0 = scmp.eq.s32.totalorder %s2177_s17, 0  ;;  %s2903_s5 = smov (%p34_p12, %s32_s5), 0 }
  0x17   : > { %p2286_p5 = por %p2245_p2, %p48_p13  ;;  %s36_s9 = ssub.s32 %s2173_s16, %s2903_s5 }
  0x18   : > { %p2280_p3 = por %p49_p0, %p48_p13  ;;  %p1863_p7 = scmp.lt.s32.totalorder %s2177_s17, 2 }
  0x19   : > { %p39_p9 = scmp.eq.s32.totalorder %s36_s9, 0  ;;  %s165_s10 = sand.u32 1, %s2165_s14  }
  0x1a   : > { %s1828_s11 = sshll.u32 %s165_s10, 10  ;;  %s1840_s19 = sshll.u32 %s2173_s16, 10 }
  0x1b   : > { %s2295_s18 = scalar_select %p39_p9, %s2165_s14, %s41_s6  }
  0x1c   : > { %s176_s26 = scalar_lea.hbm %s2866_s0, %s1840_s19  ;;  %s169_s28 = scalar_lea.vmem [#allocation2], %s1828_s11 }
  0x1d   : > { %s179_s29 = sshll.u32 %s169_s28, 4  ;;  %s177_s21 = sshll.u32 %s176_s26, 4  ;;  %s180_s29 = int_to_ptr.vmem [resolvable:$true] %s179_s29  ;;  %s178_s21 = int_to_ptr.hbm [resolvable:$true] %s177_s21 }
  0x1e   : > { %p1855_p2 = pnand %p1863_p7, %p2280_p3  ;;  %s166_s30 = scalar_lea.sflag [#allocation3], %s165_s10 }
  0x1f   : > { %s2182_s4 = smov 256   ;;  %s2183_s1 = smov 16  }
  0x20   : > { %1857 = dma.hbm_to_vmem [thread:$0]  (!%p1855_p2), %s178_s21, 16384, %s180_s29, %s166_s30, %s2182_s4, %s2182_s4, %s2183_s1  }
  0x21   : > { %191 = sbr.rel (%p2264_p8) target bundleno = 724 (0x2d4), region = 32 }
  0x26   : > { %s2306_s6 = sand.u32 1, %s2161_s13  }
  0x27   : > { %s1832_s9 = sshll.u32 %s2306_s6, 10  ;;  %s194_s11 = scalar_lea.sflag [#allocation3], %s2306_s6 }
  0x28   : > { %s2310_s19 = scalar_lea.vmem [#allocation2], %s1832_s9 }
  0x29   : > { %2144 = dma.done.wait (%p2251_p4), %s194_s11, 16384  }
  0x2a   : > { %2146 = vsyncadd (%p2251_p4), %s194_s11, 4294950912 }
  0x2b   : > { %2148 = dma.done.wait (%p2241_p1), [#allocation6], 16384  }
  0x2c   : > { %2150 = vsyncadd (%p2241_p1), [#allocation6], 4294950912  ;;  %v258_v0 = vld [vmem:[%s2310_s19 + $0xf0] sm:$0xff]  ;;  %v256_v2 = vld [vmem:[%s2310_s19 + $0xe0] sm:$0xff]  ;;  %s1834_s24 = sshll.u32 %s2306_s6, 9  ;;  %s1841_s22 = sshll.u32 %s2169_s15, 9 }
  0x2d   : > { %v322_v1 = vld [vmem:[%s2310_s19 + $0x2f0] sm:$0xff]  ;;  %676 = vmatpush.msra.mxu0 %v258_v0  ;;  %v320_v4 = vld [vmem:[%s2310_s19 + $0x2e0] sm:$0xff]  ;;  %v323_v0 = vld [vmem:[%s2310_s19 + $0x2f8] sm:$0xff]  ;;  %s2494_s25 = scalar_lea.vmem [#allocation7], %s1834_s24  ;;  %s1722_s10 = scalar_lea.hbm %s2869_s3, %s1841_s22 }
  0x2e   : > { %902 = vmatpush.msra.mxu2 %v322_v1  ;;  %v290_v3 = vld [vmem:[%s2310_s19 + $0x1f0] sm:$0xff]  ;;  %v288_v7 = vld [vmem:[%s2310_s19 + $0x1e0] sm:$0xff]  ;;  %s1723_s24 = sshll.u32 %s2494_s25, 4  ;;  %s1725_s26 = sshll.u32 %s1722_s10, 4  ;;  %s1724_s24 = int_to_ptr.vmem [resolvable:$true] %s1723_s24  ;;  %s1726_s26 = int_to_ptr.hbm [resolvable:$true] %s1725_s26 }
  0x2f   : > { %v354_v5 = vld [vmem:[%s2310_s19 + $0x3f0] sm:$0xff]  ;;  %789 = vmatpush.msra.mxu1 %v290_v3  ;;  %677 = vmatpush.msra.mxu0 %v256_v2  ;;  %v352_v9 = vld [vmem:[%s2310_s19 + $0x3e0] sm:$0xff]  ;;  %v357_v3 = vld [vmem:[#allocation5 + $0x8] sm:$0xff]  ;;  %s1709_s28 = scalar_lea.sflag [#allocation4], %s2306_s6  ;;  %s2105_s15 = sshra.s32 %s1726_s26, 4  ;;  %s2106_s15 = int_to_ptr.hbm [resolvable:$true] %s2105_s15 }
  0x30   : > { %1015 = vmatpush.msra.mxu3 %v354_v5  ;;  %v254_v6 = vld [vmem:[%s2310_s19 + $0xd0] sm:$0xff]  ;;  %903 = vmatpush.msra.mxu2 %v320_v4  ;;  %v252_v11 = vld [vmem:[%s2310_s19 + $0xc0] sm:$0xff]  ;;  %v359_v4 = vld [vmem:[#allocation5 + $0x18] sm:$0xff]  ;;  %s2107_s29 = scalar_lea.hbm %s2106_s15, 512  ;;  %p2112_p10 = scmp.lt.s32.totalorder %s2106_s15, %s2869_s3 }
  0x31   : > { %v318_v8 = vld [vmem:[%s2310_s19 + $0x2d0] sm:$0xff]  ;;  %790 = vmatpush.msra.mxu1 %v288_v7  ;;  %v316_v12 = vld [vmem:[%s2310_s19 + $0x2c0] sm:$0xff]  ;;  %678 = vmatpush.msra.mxu0 %v254_v6  ;;  %v259_v5 = vld [vmem:[%s2310_s19 + $0xf8] sm:$0xff]  ;;  %p2108_p1 = scmp.ne.s32.totalorder %s2106_s15, %s2107_s29 }
  0x32   : > { %v286_v10 = vld [vmem:[%s2310_s19 + $0x1d0] sm:$0xff]  ;;  %1016 = vmatpush.msra.mxu3 %v352_v9  ;;  %904 = vmatpush.msra.mxu2 %v318_v8  ;;  %v284_v14 = vld [vmem:[%s2310_s19 + $0x1c0] sm:$0xff]  ;;  %v355_v6 = vld [vmem:[%s2310_s19 + $0x3f8] sm:$0xff] }
  0x33   : > { %v350_v13 = vld [vmem:[%s2310_s19 + $0x3d0] sm:$0xff]  ;;  %v348_v15 = vld [vmem:[%s2310_s19 + $0x3c0] sm:$0xff]  ;;  %791 = vmatpush.msra.mxu1 %v286_v10  ;;  %679 = vmatpush.msra.mxu0 %v252_v11  ;;  %v291_v7 = vld [vmem:[%s2310_s19 + $0x1f8] sm:$0xff]  ;;  %p2109_p4 = pnand %p2108_p1, %p2286_p5 }
  0x34   : > { %1017 = vmatpush.msra.mxu3 %v350_v13  ;;  %v250_v16 = vld [vmem:[%s2310_s19 + $0xb0] sm:$0xff]  ;;  %905 = vmatpush.msra.mxu2 %v316_v12  ;;  %v248_v20 = vld [vmem:[%s2310_s19 + $0xa0] sm:$0xff]  ;;  %v321_v8 = vld [vmem:[%s2310_s19 + $0x2e8] sm:$0xff] }
  0x35   : > { %v314_v17 = vld [vmem:[%s2310_s19 + $0x2b0] sm:$0xff]  ;;  %792 = vmatpush.msra.mxu1 %v284_v14  ;;  %v312_v21 = vld [vmem:[%s2310_s19 + $0x2a0] sm:$0xff]  ;;  %680 = vmatpush.msra.mxu0 %v250_v16  ;;  %v257_v10 = vld [vmem:[%s2310_s19 + $0xe8] sm:$0xff]  ;;  %p2110_p8 = pneg %p2109_p4 }
  0x36   : > { %v282_v18 = vld [vmem:[%s2310_s19 + $0x1b0] sm:$0xff]  ;;  %1018 = vmatpush.msra.mxu3 %v348_v15  ;;  %906 = vmatpush.msra.mxu2 %v314_v17  ;;  %v280_v22 = vld [vmem:[%s2310_s19 + $0x1a0] sm:$0xff]  ;;  %v353_v11 = vld [vmem:[%s2310_s19 + $0x3e8] sm:$0xff]  ;;  %v2184_v15 = vmov 0  }
  0x37   : > { %v346_v19 = vld [vmem:[%s2310_s19 + $0x3b0] sm:$0xff]  ;;  %v344_v23 = vld [vmem:[%s2310_s19 + $0x3a0] sm:$0xff]  ;;  %793 = vmatpush.msra.mxu1 %v282_v18  ;;  %681 = vmatpush.msra.mxu0 %v248_v20  ;;  %v289_v12 = vld [vmem:[%s2310_s19 + $0x1e8] sm:$0xff] }
  0x38   : > { %1019 = vmatpush.msra.mxu3 %v346_v19  ;;  %v246_v24 = vld [vmem:[%s2310_s19 + $0x90] sm:$0xff]  ;;  %907 = vmatpush.msra.mxu2 %v312_v21  ;;  %v244_v28 = vld [vmem:[%s2310_s19 + $0x80] sm:$0xff]  ;;  %v319_v16 = vld [vmem:[%s2310_s19 + $0x2d8] sm:$0xff] }
  0x39   : > { %v310_v25 = vld [vmem:[%s2310_s19 + $0x290] sm:$0xff]  ;;  %794 = vmatpush.msra.mxu1 %v280_v22  ;;  %v308_v29 = vld [vmem:[%s2310_s19 + $0x280] sm:$0xff]  ;;  %682 = vmatpush.msra.mxu0 %v246_v24  ;;  %v361_v17 = vld [vmem:[#allocation5 + $0x28] sm:$0xff] }
  0x3a   : > { %v278_v26 = vld [vmem:[%s2310_s19 + $0x190] sm:$0xff]  ;;  %1020 = vmatpush.msra.mxu3 %v344_v23  ;;  %908 = vmatpush.msra.mxu2 %v310_v25  ;;  %v276_v30 = vld [vmem:[%s2310_s19 + $0x180] sm:$0xff]  ;;  %v363_v19 = vld [vmem:[#allocation5 + $0x38] sm:$0xff] }
  0x3b   : > { %v342_v27 = vld [vmem:[%s2310_s19 + $0x390] sm:$0xff]  ;;  %v340_v31 = vld [vmem:[%s2310_s19 + $0x380] sm:$0xff]  ;;  %795 = vmatpush.msra.mxu1 %v278_v26  ;;  %683 = vmatpush.msra.mxu0 %v244_v28  ;;  %v255_v20 = vld [vmem:[%s2310_s19 + $0xd8] sm:$0xff] }
  0x3c   : > { %1021 = vmatpush.msra.mxu3 %v342_v27  ;;  %v242_v32 = vld [vmem:[%s2310_s19 + $0x70] sm:$0xff]  ;;  %909 = vmatpush.msra.mxu2 %v308_v29  ;;  %v240_v36 = vld [vmem:[%s2310_s19 + $0x60] sm:$0xff]  ;;  %v351_v21 = vld [vmem:[%s2310_s19 + $0x3d8] sm:$0xff] }
  0x3d   : > { %v306_v33 = vld [vmem:[%s2310_s19 + $0x270] sm:$0xff]  ;;  %796 = vmatpush.msra.mxu1 %v276_v30  ;;  %v304_v37 = vld [vmem:[%s2310_s19 + $0x260] sm:$0xff]  ;;  %684 = vmatpush.msra.mxu0 %v242_v32  ;;  %v287_v22 = vld [vmem:[%s2310_s19 + $0x1d8] sm:$0xff] }
  0x3e   : > { %v274_v34 = vld [vmem:[%s2310_s19 + $0x170] sm:$0xff]  ;;  %1022 = vmatpush.msra.mxu3 %v340_v31  ;;  %910 = vmatpush.msra.mxu2 %v306_v33  ;;  %v272_v38 = vld [vmem:[%s2310_s19 + $0x160] sm:$0xff]  ;;  %v485_v23 = vld [vmem:[%s2868_s2 + $0x8] sm:$0xff] }
  0x3f   : > { %v338_v35 = vld [vmem:[%s2310_s19 + $0x370] sm:$0xff]  ;;  %v336_v39 = vld [vmem:[%s2310_s19 + $0x360] sm:$0xff]  ;;  %797 = vmatpush.msra.mxu1 %v274_v34  ;;  %685 = vmatpush.msra.mxu0 %v240_v36  ;;  %v365_v26 = vld [vmem:[#allocation5 + $0x48] sm:$0xff] }
  0x40   : > { %1023 = vmatpush.msra.mxu3 %v338_v35  ;;  %v238_v40 = vld [vmem:[%s2310_s19 + $0x50] sm:$0xff]  ;;  %911 = vmatpush.msra.mxu2 %v304_v37  ;;  %v236_v44 = vld [vmem:[%s2310_s19 + $0x40] sm:$0xff]  ;;  %v487_v27 = vld [vmem:[%s2868_s2 + $0x18] sm:$0xff] }
  0x41   : > { %v302_v41 = vld [vmem:[%s2310_s19 + $0x250] sm:$0xff]  ;;  %798 = vmatpush.msra.mxu1 %v272_v38  ;;  %v300_v45 = vld [vmem:[%s2310_s19 + $0x240] sm:$0xff]  ;;  %686 = vmatpush.msra.mxu0 %v238_v40  ;;  %v367_v28 = vld [vmem:[#allocation5 + $0x58] sm:$0xff] }
  0x42   : > { %v270_v42 = vld [vmem:[%s2310_s19 + $0x150] sm:$0xff]  ;;  %1024 = vmatpush.msra.mxu3 %v336_v39  ;;  %912 = vmatpush.msra.mxu2 %v302_v41  ;;  %v268_v46 = vld [vmem:[%s2310_s19 + $0x140] sm:$0xff]  ;;  %v317_v29 = vld [vmem:[%s2310_s19 + $0x2c8] sm:$0xff] }
  0x43   : > { %v334_v43 = vld [vmem:[%s2310_s19 + $0x350] sm:$0xff]  ;;  %v332_v47 = vld [vmem:[%s2310_s19 + $0x340] sm:$0xff]  ;;  %799 = vmatpush.msra.mxu1 %v270_v42  ;;  %687 = vmatpush.msra.mxu0 %v236_v44  ;;  %v253_v30 = vld [vmem:[%s2310_s19 + $0xc8] sm:$0xff] }
  0x44   : > { %1025 = vmatpush.msra.mxu3 %v334_v43  ;;  %v234_v48 = vld [vmem:[%s2310_s19 + $0x30] sm:$0xff]  ;;  %913 = vmatpush.msra.mxu2 %v300_v45  ;;  %v232_v52 = vld [vmem:[%s2310_s19 + $0x20] sm:$0xff]  ;;  %v349_v31 = vld [vmem:[%s2310_s19 + $0x3c8] sm:$0xff] }
  0x45   : > { %v298_v49 = vld [vmem:[%s2310_s19 + $0x230] sm:$0xff]  ;;  %800 = vmatpush.msra.mxu1 %v268_v46  ;;  %v296_v53 = vld [vmem:[%s2310_s19 + $0x220] sm:$0xff]  ;;  %688 = vmatpush.msra.mxu0 %v234_v48  ;;  %v285_v32 = vld [vmem:[%s2310_s19 + $0x1c8] sm:$0xff] }
  0x46   : > { %v266_v50 = vld [vmem:[%s2310_s19 + $0x130] sm:$0xff]  ;;  %1026 = vmatpush.msra.mxu3 %v332_v47  ;;  %914 = vmatpush.msra.mxu2 %v298_v49  ;;  %v264_v54 = vld [vmem:[%s2310_s19 + $0x120] sm:$0xff]  ;;  %v369_v35 = vld [vmem:[#allocation5 + $0x68] sm:$0xff] }
  0x47   : > { %v330_v51 = vld [vmem:[%s2310_s19 + $0x330] sm:$0xff]  ;;  %v328_v55 = vld [vmem:[%s2310_s19 + $0x320] sm:$0xff]  ;;  %801 = vmatpush.msra.mxu1 %v266_v50  ;;  %689 = vmatpush.msra.mxu0 %v232_v52  ;;  %v371_v36 = vld [vmem:[#allocation5 + $0x78] sm:$0xff] }
  0x48   : > { %1027 = vmatpush.msra.mxu3 %v330_v51  ;;  %v230_v56 = vld [vmem:[%s2310_s19 + $0x10] sm:$0xff]  ;;  %915 = vmatpush.msra.mxu2 %v296_v53  ;;  %v228_v60 = vld [vmem:[%s2310_s19] sm:$0xff]  ;;  %v373_v40 = vld [vmem:[#allocation5 + $0x88] sm:$0xff] }
  0x49   : > { %v294_v57 = vld [vmem:[%s2310_s19 + $0x210] sm:$0xff]  ;;  %802 = vmatpush.msra.mxu1 %v264_v54  ;;  %v292_v61 = vld [vmem:[%s2310_s19 + $0x200] sm:$0xff]  ;;  %690 = vmatpush.msra.mxu0 %v230_v56  ;;  %v375_v41 = vld [vmem:[#allocation5 + $0x98] sm:$0xff] }
  0x4a   : > { %v262_v58 = vld [vmem:[%s2310_s19 + $0x110] sm:$0xff]  ;;  %1028 = vmatpush.msra.mxu3 %v328_v55  ;;  %916 = vmatpush.msra.mxu2 %v294_v57  ;;  %v356_v62 = vld [vmem:[#allocation5] sm:$0xff]  ;;  %v315_v42 = vld [vmem:[%s2310_s19 + $0x2b8] sm:$0xff] }
  0x4b   : > { %v326_v59 = vld [vmem:[%s2310_s19 + $0x310] sm:$0xff]  ;;  %803 = vmatpush.msra.mxu1 %v262_v58  ;;  %v260_v1 = vld [vmem:[%s2310_s19 + $0x100] sm:$0xff]  ;;  %691 = vmatpush.msra.mxu0 %v228_v60  ;;  %v251_v43 = vld [vmem:[%s2310_s19 + $0xb8] sm:$0xff] }
  0x4c   : > { %v358_v63 = vld [vmem:[#allocation5 + $0x10] sm:$0xff]  ;;  %1029 = vmatpush.msra.mxu3 %v326_v59  ;;  %917 = vmatpush.msra.mxu2 %v292_v61  ;;  %v324_v2 = vld [vmem:[%s2310_s19 + $0x300] sm:$0xff]  ;;  %v347_v44 = vld [vmem:[%s2310_s19 + $0x3b8] sm:$0xff] }
  0x4d   : > { %692 = vmatmul.f32.vlgmr.msra.gmra.mxu0 %v356_v62  ;;  %918 = vmatmul.f32.vlgmr.msra.gmra.mxu2 %v358_v63  ;;  %v484_v9 = vld [vmem:[%s2868_s2] sm:$0xff]  ;;  %v362_v14 = vld [vmem:[#allocation5 + $0x30] sm:$0xff]  ;;  %v283_v45 = vld [vmem:[%s2310_s19 + $0x1b8] sm:$0xff] }
  0x4e   : > { %1354 = vmatpush.msrb.mxu2 %v323_v0  ;;  %804 = vmatpush.msra.mxu1 %v260_v1  ;;  %v360_v13 = vld [vmem:[#allocation5 + $0x20] sm:$0xff]  ;;  %v486_v18 = vld [vmem:[%s2868_s2 + $0x10] sm:$0xff]  ;;  %v491_v47 = vld [vmem:[%s2868_s2 + $0x38] sm:$0xff] }
  0x4f   : > { %1030 = vmatpush.msra.mxu3 %v324_v2  ;;  %805 = vmatmul.f32.vlgmr.msra.gmra.mxu1 %v357_v3  ;;  %v364_v24 = vld [vmem:[#allocation5 + $0x40] sm:$0xff]  ;;  %v366_v25 = vld [vmem:[#allocation5 + $0x50] sm:$0xff]  ;;  %v377_v50 = vld [vmem:[#allocation5 + $0xa8] sm:$0xff] }
  0x50   : > { %1031 = vmatmul.f32.vlgmr.msra.gmra.mxu3 %v359_v4  ;;  %1128 = vmatpush.msrb.mxu0 %v259_v5  ;;  %v368_v33 = vld [vmem:[#allocation5 + $0x60] sm:$0xff]  ;;  %v370_v34 = vld [vmem:[#allocation5 + $0x70] sm:$0xff]  ;;  %v379_v51 = vld [vmem:[#allocation5 + $0xb8] sm:$0xff] }
  0x51   : > { %1467 = vmatpush.msrb.mxu3 %v355_v6  ;;  %1241 = vmatpush.msrb.mxu1 %v291_v7  ;;  %v490_v37 = vld [vmem:[%s2868_s2 + $0x30] sm:$0xff]  ;;  %v372_v38 = vld [vmem:[#allocation5 + $0x80] sm:$0xff]  ;;  %v489_v52 = vld [vmem:[%s2868_s2 + $0x28] sm:$0xff] }
  0x52   : > { %1922 = vset.pattern.permute.xlu0 %v2184_v15  ;;  %1355 = vmatpush.msrb.mxu2 %v321_v8  ;;  %v374_v39 = vld [vmem:[#allocation5 + $0x90] sm:$0xff]  ;;  %v488_v46 = vld [vmem:[%s2868_s2 + $0x20] sm:$0xff]  ;;  %v381_v55 = vld [vmem:[#allocation5 + $0xc8] sm:$0xff] }
  0x53   : > { %518 = vperm.xlu0 %1922, %v484_v9   ;;  %1129 = vmatpush.msrb.mxu0 %v257_v10  ;;  %v376_v48 = vld [vmem:[#allocation5 + $0xa0] sm:$0xff]  ;;  %v378_v49 = vld [vmem:[#allocation5 + $0xb0] sm:$0xff]  ;;  %v383_v56 = vld [vmem:[#allocation5 + $0xd8] sm:$0xff] }
  0x54   : > { %1468 = vmatpush.msrb.mxu3 %v353_v11  ;;  %1242 = vmatpush.msrb.mxu1 %v289_v12  ;;  %v380_v53 = vld [vmem:[#allocation5 + $0xc0] sm:$0xff]  ;;  %v382_v54 = vld [vmem:[#allocation5 + $0xd0] sm:$0xff]  ;;  %v313_v57 = vld [vmem:[%s2310_s19 + $0x2a8] sm:$0xff] }
  0x55   : > { %695 = vmatmul.f32.gmra.mxu0 %v360_v13  ;;  %921 = vmatmul.f32.gmra.mxu2 %v362_v14  ;;  %v249_v58 = vld [vmem:[%s2310_s19 + $0xa8] sm:$0xff]  ;;  %v384_v62 = vld [vmem:[#allocation5 + $0xe0] sm:$0xff]  ;;  %v386_v63 = vld [vmem:[#allocation5 + $0xf0] sm:$0xff] }
  0x56   : > { %1923 = vset.pattern.permute.xlu1 %v2184_v15  ;;  %1356 = vmatpush.msrb.mxu2 %v319_v16  ;;  %v345_v59 = vld [vmem:[%s2310_s19 + $0x3a8] sm:$0xff]  ;;  %v387_v1 = vld [vmem:[#allocation5 + $0xf8] sm:$0xff]  ;;  %v494_v2 = vld [vmem:[%s2868_s2 + $0x50] sm:$0xff] }
  0x57   : > { %808 = vmatmul.f32.gmra.mxu1 %v361_v17  ;;  %528 = vperm.xlu1 %1923, %v486_v18   ;;  %v281_v60 = vld [vmem:[%s2310_s19 + $0x1a8] sm:$0xff]  ;;  %v388_v3 = vld [vmem:[#allocation5 + $0x100] sm:$0xff]  ;;  %v390_v4 = vld [vmem:[#allocation5 + $0x110] sm:$0xff] }
  0x58   : > { %1034 = vmatmul.f32.gmra.mxu3 %v363_v19  ;;  %1130 = vmatpush.msrb.mxu0 %v255_v20  ;;  %v493_v61 = vld [vmem:[%s2868_s2 + $0x48] sm:$0xff]  ;;  %v391_v6 = vld [vmem:[#allocation5 + $0x118] sm:$0xff]  ;;  %v492_v11 = vld [vmem:[%s2868_s2 + $0x40] sm:$0xff] }
  0x59   : > { %1469 = vmatpush.msrb.mxu3 %v351_v21  ;;  %1243 = vmatpush.msrb.mxu1 %v287_v22  ;;  %v385_v0 = vld [vmem:[#allocation5 + $0xe8] sm:$0xff]  ;;  %v311_v7 = vld [vmem:[%s2310_s19 + $0x298] sm:$0xff]  ;;  %v392_v12 = vld [vmem:[#allocation5 + $0x120] sm:$0xff] }
  0x5a   : > { %1924 = vset.pattern.permute.xlu2 %v2184_v15  ;;  %1357 = vmatpush.msrb.mxu2 %v317_v29  ;;  %v389_v5 = vld [vmem:[#allocation5 + $0x108] sm:$0xff]  ;;  %v247_v8 = vld [vmem:[%s2310_s19 + $0x98] sm:$0xff]  ;;  %v394_v13 = vld [vmem:[#allocation5 + $0x130] sm:$0xff] }
  0x5b   : > { %523 = vperm.xlu0 %1922, %v485_v23   ;;  %1131 = vmatpush.msrb.mxu0 %v253_v30  ;;  %v343_v9 = vld [vmem:[%s2310_s19 + $0x398] sm:$0xff]  ;;  %v393_v14 = vld [vmem:[#allocation5 + $0x128] sm:$0xff]  ;;  %v496_v16 = vld [vmem:[%s2868_s2 + $0x60] sm:$0xff] }
  0x5c   : > { %1470 = vmatpush.msrb.mxu3 %v349_v31  ;;  %1244 = vmatpush.msrb.mxu1 %v285_v32  ;;  %v279_v10 = vld [vmem:[%s2310_s19 + $0x198] sm:$0xff]  ;;  %v396_v17 = vld [vmem:[#allocation5 + $0x140] sm:$0xff]  ;;  %v398_v18 = vld [vmem:[#allocation5 + $0x150] sm:$0xff] }
  0x5d   : > { %698 = vmatmul.f32.gmra.mxu0 %v364_v24  ;;  %924 = vmatmul.f32.gmra.mxu2 %v366_v25  ;;  %v395_v15 = vld [vmem:[#allocation5 + $0x138] sm:$0xff]  ;;  %v397_v19 = vld [vmem:[#allocation5 + $0x148] sm:$0xff]  ;;  %v404_v31 = vld [vmem:[#allocation5 + $0x180] sm:$0xff] }
  0x5e   : > { %1358 = vmatpush.msrb.mxu2 %v315_v42  ;;  %1132 = vmatpush.msrb.mxu0 %v251_v43  ;;  %v399_v20 = vld [vmem:[#allocation5 + $0x158] sm:$0xff]  ;;  %v309_v21 = vld [vmem:[%s2310_s19 + $0x288] sm:$0xff]  ;;  %v406_v32 = vld [vmem:[#allocation5 + $0x190] sm:$0xff] }
  0x5f   : > { %811 = vmatmul.f32.gmra.mxu1 %v365_v26  ;;  %533 = vperm.xlu1 %1923, %v487_v27   ;;  %v245_v22 = vld [vmem:[%s2310_s19 + $0x88] sm:$0xff]  ;;  %v400_v26 = vld [vmem:[#allocation5 + $0x160] sm:$0xff]  ;;  %v402_v27 = vld [vmem:[#allocation5 + $0x170] sm:$0xff] }
  0x60   : > { %1037 = vmatmul.f32.gmra.mxu3 %v367_v28  ;;  %1245 = vmatpush.msrb.mxu1 %v283_v45  ;;  %v341_v23 = vld [vmem:[%s2310_s19 + $0x388] sm:$0xff]  ;;  %v403_v29 = vld [vmem:[#allocation5 + $0x178] sm:$0xff]  ;;  %v412_v45 = vld [vmem:[#allocation5 + $0x1c0] sm:$0xff] }
  0x61   : > { %1471 = vmatpush.msrb.mxu3 %v347_v44  ;;  %538 = vperm.xlu2 %1924, %v488_v46   ;;  %v277_v24 = vld [vmem:[%s2310_s19 + $0x188] sm:$0xff]  ;;  %v495_v30 = vld [vmem:[%s2868_s2 + $0x58] sm:$0xff]  ;;  %v500_v44 = vld [vmem:[%s2868_s2 + $0x80] sm:$0xff] }
  0x62   : > { %1359 = vmatpush.msrb.mxu2 %v313_v57  ;;  %1133 = vmatpush.msrb.mxu0 %v249_v58  ;;  %v497_v25 = vld [vmem:[%s2868_s2 + $0x68] sm:$0xff]  ;;  %v411_v43 = vld [vmem:[#allocation5 + $0x1b8] sm:$0xff]  ;;  %v414_v46 = vld [vmem:[#allocation5 + $0x1d0] sm:$0xff] }
  0x63   : > { %548 = vperm.xlu0 %1922, %v490_v37   ;;  %1472 = vmatpush.msrb.mxu3 %v345_v59  ;;  %v401_v28 = vld [vmem:[#allocation5 + $0x168] sm:$0xff]  ;;  %v339_v37 = vld [vmem:[%s2310_s19 + $0x378] sm:$0xff]  ;;  %v502_v59 = vld [vmem:[%s2868_s2 + $0x90] sm:$0xff] }
  0x64   : > { %1246 = vmatpush.msrb.mxu1 %v281_v60  ;;  %1360 = vmatpush.msrb.mxu2 %v311_v7  ;;  %v409_v42 = vld [vmem:[#allocation5 + $0x1a8] sm:$0xff]  ;;  %v419_v57 = vld [vmem:[#allocation5 + $0x1f8] sm:$0xff] }
  0x65   : > { %701 = vmatmul.f32.gmra.mxu0 %v368_v33  ;;  %927 = vmatmul.f32.gmra.mxu2 %v370_v34  ;;  %v405_v33 = vld [vmem:[#allocation5 + $0x188] sm:$0xff]  ;;  %v407_v34 = vld [vmem:[#allocation5 + $0x198] sm:$0xff] }
  0x66   : > { %1134 = vmatpush.msrb.mxu0 %v247_v8  ;;  %1473 = vmatpush.msrb.mxu3 %v343_v9  ;;  %v239_v7 = vld [vmem:[%s2310_s19 + $0x58] sm:$0xff] }
  0x67   : > { %814 = vmatmul.f32.gmra.mxu1 %v369_v35  ;;  %553 = vperm.xlu1 %1923, %v491_v47   ;;  %v307_v35 = vld [vmem:[%s2310_s19 + $0x278] sm:$0xff]  ;;  %v413_v47 = vld [vmem:[#allocation5 + $0x1c8] sm:$0xff] }
  0x68   : > { %1040 = vmatmul.f32.gmra.mxu3 %v371_v36  ;;  %1247 = vmatpush.msrb.mxu1 %v279_v10  ;;  %v243_v36 = vld [vmem:[%s2310_s19 + $0x78] sm:$0xff] }
  0x69   : > { %543 = vperm.xlu2 %1924, %v489_v52   ;;  %1361 = vmatpush.msrb.mxu2 %v309_v21  ;;  %v273_v52 = vld [vmem:[%s2310_s19 + $0x168] sm:$0xff]  ;;  %v335_v8 = vld [vmem:[%s2310_s19 + $0x358] sm:$0xff] }
  0x6a   : > { %1135 = vmatpush.msrb.mxu0 %v245_v22  ;;  %1474 = vmatpush.msrb.mxu3 %v341_v23  ;;  %v271_v10 = vld [vmem:[%s2310_s19 + $0x158] sm:$0xff] }
  0x6b   : > { %563 = vperm.xlu0 %1922, %v493_v61   ;;  %1248 = vmatpush.msrb.mxu1 %v277_v24  ;;  %v420_v61 = vld [vmem:[#allocation5 + $0x200] sm:$0xff]  ;;  %v427_v21 = vld [vmem:[#allocation5 + $0x238] sm:$0xff] }
  0x6c   : > { %1362 = vmatpush.msrb.mxu2 %v307_v35  ;;  %1136 = vmatpush.msrb.mxu0 %v243_v36  ;;  %v431_v36 = vld [vmem:[#allocation5 + $0x258] sm:$0xff] }
  0x6d   : > { %704 = vmatmul.f32.gmra.mxu0 %v372_v38  ;;  %930 = vmatmul.f32.gmra.mxu2 %v374_v39  ;;  %v275_v38 = vld [vmem:[%s2310_s19 + $0x178] sm:$0xff] }
  0x6e   : > { %1475 = vmatpush.msrb.mxu3 %v339_v37  ;;  %v499_v39 = vld [vmem:[%s2868_s2 + $0x78] sm:$0xff]  ;;  %1249 = vmatpush.msrb.mxu1 %v275_v38 }
  0x6f   : > { %817 = vmatmul.f32.gmra.mxu1 %v373_v40  ;;  %568 = vperm.xlu1 %1923, %v494_v2   ;;  %v408_v40 = vld [vmem:[#allocation5 + $0x1a0] sm:$0xff] }
  0x70   : > { %1043 = vmatmul.f32.gmra.mxu3 %v375_v41  ;;  %v410_v41 = vld [vmem:[#allocation5 + $0x1b0] sm:$0xff]  ;;  %1250 = vmatpush.msrb.mxu1 %v273_v52 }
  0x71   : > { %558 = vperm.xlu2 %1924, %v492_v11   ;;  %v503_v11 = vld [vmem:[%s2868_s2 + $0x98] sm:$0xff] }
  0x72   : > { %1251 = vmatpush.msrb.mxu1 %v271_v10 }
  0x73   : > { %578 = vperm.xlu0 %1922, %v496_v16  }
  0x75   : > { %707 = vmatmul.f32.gmra.mxu0 %v376_v48  ;;  %933 = vmatmul.f32.gmra.mxu2 %v378_v49  ;;  %v415_v48 = vld [vmem:[#allocation5 + $0x1d8] sm:$0xff]  ;;  %v305_v49 = vld [vmem:[%s2310_s19 + $0x268] sm:$0xff] }
  0x76   : > { %1363 = vmatpush.msrb.mxu2 %v305_v49 }
  0x77   : > { %820 = vmatmul.f32.gmra.mxu1 %v377_v50  ;;  %583 = vperm.xlu1 %1923, %v497_v25   ;;  %v241_v50 = vld [vmem:[%s2310_s19 + $0x68] sm:$0xff] }
  0x78   : > { %1046 = vmatmul.f32.gmra.mxu3 %v379_v51  ;;  %v337_v51 = vld [vmem:[%s2310_s19 + $0x368] sm:$0xff]  ;;  %1137 = vmatpush.msrb.mxu0 %v241_v50 }
  0x79   : > { %573 = vperm.xlu2 %1924, %v495_v30   ;;  %1476 = vmatpush.msrb.mxu3 %v337_v51 }
  0x7a   : > { %1138 = vmatpush.msrb.mxu0 %v239_v7 }
  0x7b   : > { %593 = vperm.xlu0 %1922, %v499_v39   ;;  %1477 = vmatpush.msrb.mxu3 %v335_v8  ;;  %v439_v8 = vld [vmem:[#allocation5 + $0x298] sm:$0xff] }
  0x7d   : > { %710 = vmatmul.f32.gmra.mxu0 %v380_v53  ;;  %936 = vmatmul.f32.gmra.mxu2 %v382_v54  ;;  %v498_v53 = vld [vmem:[%s2868_s2 + $0x70] sm:$0xff]  ;;  %v416_v54 = vld [vmem:[#allocation5 + $0x1e0] sm:$0xff] }
  0x7f   : > { %823 = vmatmul.f32.gmra.mxu1 %v381_v55  ;;  %598 = vperm.xlu1 %1923, %v500_v44   ;;  %v418_v55 = vld [vmem:[#allocation5 + $0x1f0] sm:$0xff]  ;;  %v269_v44 = vld [vmem:[%s2310_s19 + $0x148] sm:$0xff] }
  0x80   : > { %1049 = vmatmul.f32.gmra.mxu3 %v383_v56  ;;  %v417_v56 = vld [vmem:[#allocation5 + $0x1e8] sm:$0xff]  ;;  %1252 = vmatpush.msrb.mxu1 %v269_v44  ;;  %v447_v44 = vld [vmem:[#allocation5 + $0x2d8] sm:$0xff] }
  0x81   : > { %588 = vperm.xlu2 %1924, %v498_v53   ;;  %v433_v53 = vld [vmem:[#allocation5 + $0x268] sm:$0xff] }
  0x83   : > { %608 = vperm.xlu0 %1922, %v502_v59  }
  0x85   : > { %713 = vmatmul.f32.gmra.mxu0 %v384_v62  ;;  %939 = vmatmul.f32.gmra.mxu2 %v386_v63  ;;  %v422_v62 = vld [vmem:[#allocation5 + $0x210] sm:$0xff] }
  0x87   : > { %826 = vmatmul.f32.gmra.mxu1 %v385_v0  ;;  %613 = vperm.xlu1 %1923, %v503_v11  }
  0x88   : > { %1052 = vmatmul.f32.gmra.mxu3 %v387_v1  ;;  %v421_v1 = vld [vmem:[#allocation5 + $0x208] sm:$0xff] }
  0x8d   : > { %716 = vmatmul.f32.gmra.mxu0 %v388_v3  ;;  %942 = vmatmul.f32.gmra.mxu2 %v390_v4  ;;  %v423_v3 = vld [vmem:[#allocation5 + $0x218] sm:$0xff] }
  0x8f   : > { %829 = vmatmul.f32.gmra.mxu1 %v389_v5 }
  0x90   : > { %1055 = vmatmul.f32.gmra.mxu3 %v391_v6  ;;  %v303_v6 = vld [vmem:[%s2310_s19 + $0x258] sm:$0xff] }
  0x91   : > { %1364 = vmatpush.msrb.mxu2 %v303_v6  ;;  %v437_v6 = vld [vmem:[#allocation5 + $0x288] sm:$0xff] }
  0x95   : > { %719 = vmatmul.f32.gmra.mxu0 %v392_v12  ;;  %945 = vmatmul.f32.gmra.mxu2 %v394_v13  ;;  %v424_v13 = vld [vmem:[#allocation5 + $0x220] sm:$0xff] }
  0x97   : > { %832 = vmatmul.f32.gmra.mxu1 %v393_v14  ;;  %v426_v14 = vld [vmem:[#allocation5 + $0x230] sm:$0xff] }
  0x98   : > { %1058 = vmatmul.f32.gmra.mxu3 %v395_v15 }
  0x9d   : > { %722 = vmatmul.f32.gmra.mxu0 %v396_v17  ;;  %948 = vmatmul.f32.gmra.mxu2 %v398_v18 }
  0x9f   : > { %835 = vmatmul.f32.gmra.mxu1 %v397_v19  ;;  %v425_v19 = vld [vmem:[#allocation5 + $0x228] sm:$0xff] }
  0xa0   : > { %1061 = vmatmul.f32.gmra.mxu3 %v399_v20 }
  0xa5   : > { %725 = vmatmul.f32.gmra.mxu0 %v400_v26  ;;  %951 = vmatmul.f32.gmra.mxu2 %v402_v27  ;;  %v501_v26 = vld [vmem:[%s2868_s2 + $0x88] sm:$0xff] }
  0xa6   : > { %603 = vperm.xlu2 %1924, %v501_v26   ;;  %v441_v26 = vld [vmem:[#allocation5 + $0x2a8] sm:$0xff] }
  0xa7   : > { %838 = vmatmul.f32.gmra.mxu1 %v401_v28  ;;  %v428_v28 = vld [vmem:[#allocation5 + $0x240] sm:$0xff] }
  0xa8   : > { %1064 = vmatmul.f32.gmra.mxu3 %v403_v29  ;;  %v430_v29 = vld [vmem:[#allocation5 + $0x250] sm:$0xff] }
  0xad   : > { %728 = vmatmul.f32.gmra.mxu0 %v404_v31  ;;  %954 = vmatmul.f32.gmra.mxu2 %v406_v32 }
  0xaf   : > { %841 = vmatmul.f32.gmra.mxu1 %v405_v33 }
  0xb0   : > { %1067 = vmatmul.f32.gmra.mxu3 %v407_v34  ;;  %v429_v34 = vld [vmem:[#allocation5 + $0x248] sm:$0xff] }
  0xb5   : > { %731 = vmatmul.f32.gmra.mxu0 %v408_v40  ;;  %957 = vmatmul.f32.gmra.mxu2 %v410_v41  ;;  %v301_v40 = vld [vmem:[%s2310_s19 + $0x248] sm:$0xff] }
  0xb6   : > { %v237_v41 = vld [vmem:[%s2310_s19 + $0x48] sm:$0xff]  ;;  %1365 = vmatpush.msrb.mxu2 %v301_v40 }
  0xb7   : > { %844 = vmatmul.f32.gmra.mxu1 %v409_v42  ;;  %v333_v42 = vld [vmem:[%s2310_s19 + $0x348] sm:$0xff]  ;;  %1139 = vmatpush.msrb.mxu0 %v237_v41 }
  0xb8   : > { %1070 = vmatmul.f32.gmra.mxu3 %v411_v43 }
  0xb9   : > { %1478 = vmatpush.msrb.mxu3 %v333_v42  ;;  %v445_v42 = vld [vmem:[#allocation5 + $0x2c8] sm:$0xff] }
  0xbd   : > { %734 = vmatmul.f32.gmra.mxu0 %v412_v45  ;;  %960 = vmatmul.f32.gmra.mxu2 %v414_v46  ;;  %v505_v45 = vld [vmem:[%s2868_s2 + $0xa8] sm:$0xff] }
  0xbe   : > { %623 = vperm.xlu0 %1922, %v505_v45  }
  0xbf   : > { %847 = vmatmul.f32.gmra.mxu1 %v413_v47  ;;  %v432_v47 = vld [vmem:[#allocation5 + $0x260] sm:$0xff] }
  0xc0   : > { %1073 = vmatmul.f32.gmra.mxu3 %v415_v48  ;;  %v434_v48 = vld [vmem:[#allocation5 + $0x270] sm:$0xff] }
  0xc5   : > { %737 = vmatmul.f32.gmra.mxu0 %v416_v54  ;;  %963 = vmatmul.f32.gmra.mxu2 %v418_v55  ;;  %v2475_v58 = vpop.permute.xlu0 %518  ;;  %v435_v55 = vld [vmem:[#allocation5 + $0x278] sm:$0xff] }
  0xc7   : > { %850 = vmatmul.f32.gmra.mxu1 %v417_v56 }
  0xc8   : > { %1076 = vmatmul.f32.gmra.mxu3 %v419_v57  ;;  %v2512_v57 = vpop.permute.xlu2 %538 }
  0xc9   : > { %v2492_v23 = vpop.permute.xlu1 %528 }
  0xca   : > { %v693_v60 = vpop.f32.mrf.mxu0 }
  0xcb   : > { %v694_v63 = vadd.f32 %v693_v60, %v2475_v58 }
  0xcc   : > { %v806_v0 = vpop.f32.mrf.mxu1 }
  0xcd   : > { %v807_v2 = vadd.f32 %v806_v0, %v694_v63  ;;  %740 = vmatmul.f32.gmra.mxu0 %v420_v61  ;;  %966 = vmatmul.f32.gmra.mxu2 %v422_v62  ;;  %v2481_v5 = vpop.permute.xlu0 %523  ;;  %v506_v61 = vld [vmem:[%s2868_s2 + $0xb0] sm:$0xff]  ;;  %v436_v63 = vld [vmem:[#allocation5 + $0x280] sm:$0xff] }
  0xce   : > { %v438_v0 = vld [vmem:[#allocation5 + $0x290] sm:$0xff]  ;;  %628 = vperm.xlu1 %1923, %v506_v61  }
  0xcf   : > { %853 = vmatmul.f32.gmra.mxu1 %v421_v1 }
  0xd0   : > { %1079 = vmatmul.f32.gmra.mxu3 %v423_v3  ;;  %v919_v4 = vpop.f32.mrf.mxu2  ;;  %v2520_v11 = vpop.permute.xlu2 %543 }
  0xd1   : > { %v920_v9 = vadd.f32 %v919_v4, %v807_v2  ;;  %v2502_v39 = vpop.permute.xlu1 %533 }
  0xd2   : > { %v696_v12 = vpop.f32.mrf.mxu0 }
  0xd3   : > { %v1032_v15 = vpop.f32.mrf.mxu3  ;;  %v697_v16 = vadd.f32 %v696_v12, %v2481_v5  ;;  %v299_v12 = vld [vmem:[%s2310_s19 + $0x238] sm:$0xff] }
  0xd4   : > { %v1033_v17 = vadd.f32 %v1032_v15, %v920_v9  ;;  %v809_v18 = vpop.f32.mrf.mxu1  ;;  %1366 = vmatpush.msrb.mxu2 %v299_v12 }
  0xd5   : > { %v810_v20 = vadd.f32 %v809_v18, %v697_v16  ;;  %743 = vmatmul.f32.gmra.mxu0 %v424_v13  ;;  %969 = vmatmul.f32.gmra.mxu2 %v426_v14  ;;  %v235_v13 = vld [vmem:[%s2310_s19 + $0x38] sm:$0xff] }
  0xd6   : > { %v1580_v22 = vmax.f32 %v1033_v17, 0.0  ;;  %v331_v14 = vld [vmem:[%s2310_s19 + $0x338] sm:$0xff]  ;;  %1140 = vmatpush.msrb.mxu0 %v235_v13  ;;  %v504_v17 = vld [vmem:[%s2868_s2 + $0xa0] sm:$0xff] }
  0xd7   : > { %856 = vmatmul.f32.gmra.mxu1 %v425_v19  ;;  %v267_v16 = vld [vmem:[%s2310_s19 + $0x138] sm:$0xff]  ;;  %v440_v19 = vld [vmem:[#allocation5 + $0x2a0] sm:$0xff]  ;;  %1479 = vmatpush.msrb.mxu3 %v331_v14 }
  0xd8   : > { %1644 = vst [vmem:[%s2494_s25] sm:$0xff] %v1580_v22  ;;  %1082 = vmatmul.f32.gmra.mxu3 %v427_v21  ;;  %v922_v24 = vpop.f32.mrf.mxu2  ;;  %1253 = vmatpush.msrb.mxu1 %v267_v16  ;;  %v453_v16 = vld [vmem:[#allocation5 + $0x308] sm:$0xff] }
  0xd9   : > { %v923_v25 = vadd.f32 %v922_v24, %v810_v20  ;;  %v442_v20 = vld [vmem:[#allocation5 + $0x2b0] sm:$0xff]  ;;  %618 = vperm.xlu2 %1924, %v504_v17  }
  0xda   : > { %v699_v27 = vpop.f32.mrf.mxu0 }
  0xdb   : > { %v1035_v30 = vpop.f32.mrf.mxu3  ;;  %v700_v31 = vadd.f32 %v699_v27, %v2492_v23 }
  0xdc   : > { %v1036_v32 = vadd.f32 %v1035_v30, %v923_v25  ;;  %v812_v33 = vpop.f32.mrf.mxu1 }
  0xdd   : > { %v813_v35 = vadd.f32 %v812_v33, %v700_v31  ;;  %746 = vmatmul.f32.gmra.mxu0 %v428_v28  ;;  %972 = vmatmul.f32.gmra.mxu2 %v430_v29  ;;  %v443_v28 = vld [vmem:[#allocation5 + $0x2b8] sm:$0xff]  ;;  %v2531_v31 = vpop.permute.xlu0 %548  ;;  %v508_v33 = vld [vmem:[%s2868_s2 + $0xc0] sm:$0xff] }
  0xde   : > { %v1582_v37 = vmax.f32 %v1036_v32, 0.0  ;;  %638 = vperm.xlu0 %1922, %v508_v33  }
  0xdf   : > { %859 = vmatmul.f32.gmra.mxu1 %v429_v34 }
  0xe0   : > { %1646 = vst [vmem:[%s2494_s25 + $0x10] sm:$0xff] %v1582_v37  ;;  %1085 = vmatmul.f32.gmra.mxu3 %v431_v36  ;;  %v925_v38 = vpop.f32.mrf.mxu2  ;;  %v446_v36 = vld [vmem:[#allocation5 + $0x2d0] sm:$0xff] }
  0xe1   : > { %v926_v43 = vadd.f32 %v925_v38, %v813_v35  ;;  %v444_v35 = vld [vmem:[#allocation5 + $0x2c0] sm:$0xff] }
  0xe2   : > { %v702_v46 = vpop.f32.mrf.mxu0 }
  0xe3   : > { %v1038_v49 = vpop.f32.mrf.mxu3  ;;  %v703_v50 = vadd.f32 %v702_v46, %v2502_v39 }
  0xe4   : > { %v1039_v51 = vadd.f32 %v1038_v49, %v926_v43  ;;  %v815_v52 = vpop.f32.mrf.mxu1  ;;  %v233_v49 = vld [vmem:[%s2310_s19 + $0x28] sm:$0xff] }
  0xe5   : > { %v816_v54 = vadd.f32 %v815_v52, %v703_v50  ;;  %749 = vmatmul.f32.gmra.mxu0 %v432_v47  ;;  %975 = vmatmul.f32.gmra.mxu2 %v434_v48  ;;  %v2538_v47 = vpop.permute.xlu1 %553  ;;  %v297_v48 = vld [vmem:[%s2310_s19 + $0x228] sm:$0xff] }
  0xe6   : > { %v1584_v56 = vmax.f32 %v1039_v51, 0.0  ;;  %v329_v50 = vld [vmem:[%s2310_s19 + $0x328] sm:$0xff]  ;;  %1367 = vmatpush.msrb.mxu2 %v297_v48  ;;  %1141 = vmatpush.msrb.mxu0 %v233_v49  ;;  %v460_v48 = vld [vmem:[#allocation5 + $0x340] sm:$0xff]  ;;  %v462_v49 = vld [vmem:[#allocation5 + $0x350] sm:$0xff] }
  0xe7   : > { %862 = vmatmul.f32.gmra.mxu1 %v433_v53  ;;  %v265_v52 = vld [vmem:[%s2310_s19 + $0x128] sm:$0xff]  ;;  %1480 = vmatpush.msrb.mxu3 %v329_v50 }
  0xe8   : > { %1648 = vst [vmem:[%s2494_s25 + $0x20] sm:$0xff] %v1584_v56  ;;  %1088 = vmatmul.f32.gmra.mxu3 %v435_v55  ;;  %v928_v59 = vpop.f32.mrf.mxu2  ;;  %v509_v53 = vld [vmem:[%s2868_s2 + $0xc8] sm:$0xff]  ;;  %v448_v55 = vld [vmem:[#allocation5 + $0x2e0] sm:$0xff]  ;;  %v450_v56 = vld [vmem:[#allocation5 + $0x2f0] sm:$0xff]  ;;  %1254 = vmatpush.msrb.mxu1 %v265_v52 }
  0xe9   : > { %v929_v60 = vadd.f32 %v928_v59, %v816_v54  ;;  %643 = vperm.xlu1 %1923, %v509_v53  }
  0xea   : > { %v705_v62 = vpop.f32.mrf.mxu0 }
  0xeb   : > { %v1041_v1 = vpop.f32.mrf.mxu3  ;;  %v706_v2 = vadd.f32 %v705_v62, %v2512_v57 }
  0xec   : > { %v1042_v3 = vadd.f32 %v1041_v1, %v929_v60  ;;  %v818_v4 = vpop.f32.mrf.mxu1  ;;  %v451_v1 = vld [vmem:[#allocation5 + $0x2f8] sm:$0xff] }
  0xed   : > { %v819_v7 = vadd.f32 %v818_v4, %v706_v2  ;;  %752 = vmatmul.f32.gmra.mxu0 %v436_v63  ;;  %978 = vmatmul.f32.gmra.mxu2 %v438_v0  ;;  %v449_v63 = vld [vmem:[#allocation5 + $0x2e8] sm:$0xff]  ;;  %v2549_v4 = vpop.permute.xlu2 %558 }
  0xee   : > { %v1586_v9 = vmax.f32 %v1042_v3, 0.0 }
  0xef   : > { %865 = vmatmul.f32.gmra.mxu1 %v437_v6 }
  0xf0   : > { %1650 = vst [vmem:[%s2494_s25 + $0x30] sm:$0xff] %v1586_v9  ;;  %1091 = vmatmul.f32.gmra.mxu3 %v439_v8  ;;  %v931_v10 = vpop.f32.mrf.mxu2  ;;  %v452_v9 = vld [vmem:[#allocation5 + $0x300] sm:$0xff] }
  0xf1   : > { %v932_v15 = vadd.f32 %v931_v10, %v819_v7  ;;  %v507_v7 = vld [vmem:[%s2868_s2 + $0xb8] sm:$0xff]  ;;  %v454_v10 = vld [vmem:[#allocation5 + $0x310] sm:$0xff] }
  0xf2   : > { %v708_v18 = vpop.f32.mrf.mxu0  ;;  %633 = vperm.xlu2 %1924, %v507_v7   ;;  %v2589_v7 = vld [vmem:[#allocation5 + $0x360] sm:$0xff] }
  0xf3   : > { %v1044_v21 = vpop.f32.mrf.mxu3  ;;  %v709_v22 = vadd.f32 %v708_v18, %v2520_v11  ;;  %v455_v18 = vld [vmem:[#allocation5 + $0x318] sm:$0xff] }
  0xf4   : > { %v1045_v24 = vadd.f32 %v1044_v21, %v932_v15  ;;  %v821_v25 = vpop.f32.mrf.mxu1  ;;  %v2556_v21 = vpop.permute.xlu0 %563 }
  0xf5   : > { %v822_v27 = vadd.f32 %v821_v25, %v709_v22  ;;  %755 = vmatmul.f32.gmra.mxu0 %v440_v19  ;;  %981 = vmatmul.f32.gmra.mxu2 %v442_v20  ;;  %v295_v22 = vld [vmem:[%s2310_s19 + $0x218] sm:$0xff] }
  0xf6   : > { %v1588_v29 = vmax.f32 %v1045_v24, 0.0  ;;  %v231_v24 = vld [vmem:[%s2310_s19 + $0x18] sm:$0xff]  ;;  %1368 = vmatpush.msrb.mxu2 %v295_v22  ;;  %v514_v22 = vld [vmem:[%s2868_s2 + $0xf0] sm:$0xff] }
  0xf7   : > { %868 = vmatmul.f32.gmra.mxu1 %v441_v26  ;;  %v327_v25 = vld [vmem:[%s2310_s19 + $0x318] sm:$0xff]  ;;  %1142 = vmatpush.msrb.mxu0 %v231_v24 }
  0xf8   : > { %1652 = vst [vmem:[%s2494_s25 + $0x40] sm:$0xff] %v1588_v29  ;;  %1094 = vmatmul.f32.gmra.mxu3 %v443_v28  ;;  %v934_v30 = vpop.f32.mrf.mxu2  ;;  %v511_v28 = vld [vmem:[%s2868_s2 + $0xd8] sm:$0xff] }
  0xf9   : > { %v935_v32 = vadd.f32 %v934_v30, %v822_v27  ;;  %v263_v27 = vld [vmem:[%s2310_s19 + $0x118] sm:$0xff]  ;;  %v456_v30 = vld [vmem:[#allocation5 + $0x320] sm:$0xff]  ;;  %1481 = vmatpush.msrb.mxu3 %v327_v25  ;;  %653 = vperm.xlu0 %1922, %v511_v28  }
  0xfa   : > { %v711_v34 = vpop.f32.mrf.mxu0  ;;  %1255 = vmatpush.msrb.mxu1 %v263_v27  ;;  %v2608_v25 = vld [vmem:[#allocation5 + $0x380] sm:$0xff] }
  0xfb   : > { %v1047_v37 = vpop.f32.mrf.mxu3  ;;  %v712_v38 = vadd.f32 %v711_v34, %v2531_v31 }
  0xfc   : > { %v1048_v40 = vadd.f32 %v1047_v37, %v935_v32  ;;  %v824_v41 = vpop.f32.mrf.mxu1  ;;  %v458_v32 = vld [vmem:[#allocation5 + $0x330] sm:$0xff]  ;;  %v457_v37 = vld [vmem:[#allocation5 + $0x328] sm:$0xff] }
  0xfd   : > { %v825_v43 = vadd.f32 %v824_v41, %v712_v38  ;;  %758 = vmatmul.f32.gmra.mxu0 %v444_v35  ;;  %984 = vmatmul.f32.gmra.mxu2 %v446_v36 }
  0xfe   : > { %v1590_v45 = vmax.f32 %v1048_v40, 0.0  ;;  %v459_v40 = vld [vmem:[#allocation5 + $0x338] sm:$0xff] }
  0xff   : > { %871 = vmatmul.f32.gmra.mxu1 %v445_v42 }
 0x100   : > { %1654 = vst [vmem:[%s2494_s25 + $0x50] sm:$0xff] %v1590_v45  ;;  %1097 = vmatmul.f32.gmra.mxu3 %v447_v44  ;;  %v937_v46 = vpop.f32.mrf.mxu2  ;;  %v512_v45 = vld [vmem:[%s2868_s2 + $0xe0] sm:$0xff] }
 0x101   : > { %v938_v51 = vadd.f32 %v937_v46, %v825_v43  ;;  %v2567_v43 = vpop.permute.xlu1 %568  ;;  %658 = vperm.xlu1 %1923, %v512_v45   ;;  %668 = vperm.xlu0 %1922, %v514_v22  }
 0x102   : > { %v714_v54 = vpop.f32.mrf.mxu0 }
 0x103   : > { %v1050_v59 = vpop.f32.mrf.mxu3  ;;  %v715_v60 = vadd.f32 %v714_v54, %v2538_v47  ;;  %v2573_v54 = vld [vmem:[#allocation5 + $0x348] sm:$0xff] }
 0x104   : > { %v1051_v61 = vadd.f32 %v1050_v59, %v938_v51  ;;  %v827_v62 = vpop.f32.mrf.mxu1 }
 0x105   : > { %v828_v0 = vadd.f32 %v827_v62, %v715_v60  ;;  %761 = vmatmul.f32.gmra.mxu0 %v448_v55  ;;  %987 = vmatmul.f32.gmra.mxu2 %v450_v56  ;;  %v2575_v56 = vld [vmem:[#allocation5 + $0x358] sm:$0xff]  ;;  %v293_v62 = vld [vmem:[%s2310_s19 + $0x208] sm:$0xff] }
 0x106   : > { %v1592_v2 = vmax.f32 %v1051_v61, 0.0  ;;  %v2580_v61 = vpop.permute.xlu2 %573  ;;  %1369 = vmatpush.msrb.mxu2 %v293_v62  ;;  %v513_v62 = vld [vmem:[%s2868_s2 + $0xe8] sm:$0xff] }
 0x107   : > { %874 = vmatmul.f32.gmra.mxu1 %v449_v63  ;;  %v229_v63 = vld [vmem:[%s2310_s19 + $0x8] sm:$0xff] }
 0x108   : > { %1656 = vst [vmem:[%s2494_s25 + $0x60] sm:$0xff] %v1592_v2  ;;  %1100 = vmatmul.f32.gmra.mxu3 %v451_v1  ;;  %v940_v3 = vpop.f32.mrf.mxu2  ;;  %1143 = vmatpush.msrb.mxu0 %v229_v63  ;;  %v261_v2 = vld [vmem:[%s2310_s19 + $0x108] sm:$0xff] }
 0x109   : > { %v941_v6 = vadd.f32 %v940_v3, %v828_v0  ;;  %v325_v0 = vld [vmem:[%s2310_s19 + $0x308] sm:$0xff]  ;;  %v510_v3 = vld [vmem:[%s2868_s2 + $0xd0] sm:$0xff]  ;;  %1256 = vmatpush.msrb.mxu1 %v261_v2  ;;  %s2111_s19 = scalar_lea.hbm %s2869_s3, 1024 }
 0x10a   : > { %v717_v8 = vpop.f32.mrf.mxu0  ;;  %1482 = vmatpush.msrb.mxu3 %v325_v0  ;;  %648 = vperm.xlu2 %1924, %v510_v3   ;;  %v2646_v0 = vld [vmem:[#allocation5 + $0x3c0] sm:$0xff]  ;;  %p2113_p12 = scmp.lt.s32.totalorder %s2111_s19, %s2107_s29 }
 0x10b   : > { %v1053_v12 = vpop.f32.mrf.mxu3  ;;  %v718_v13 = vadd.f32 %v717_v8, %v2549_v4  ;;  %v2591_v8 = vld [vmem:[#allocation5 + $0x370] sm:$0xff] }
 0x10c   : > { %v1054_v14 = vadd.f32 %v1053_v12, %v941_v6  ;;  %v830_v15 = vpop.f32.mrf.mxu1  ;;  %p2114_p13 = por %p2113_p12, %p2112_p10 }
 0x10d   : > { %v831_v17 = vadd.f32 %v830_v15, %v718_v13  ;;  %764 = vmatmul.f32.gmra.mxu0 %v452_v9  ;;  %990 = vmatmul.f32.gmra.mxu2 %v454_v10 }
 0x10e   : > { %v1594_v19 = vmax.f32 %v1054_v14, 0.0  ;;  %v2594_v14 = vld [vmem:[#allocation5 + $0x368] sm:$0xff]  ;;  %p2115_p0 = pnand %p2114_p13, %p2110_p8 }
 0x10f   : > { %877 = vmatmul.f32.gmra.mxu1 %v453_v16  ;;  %v2598_v16 = vld [vmem:[#allocation5 + $0x378] sm:$0xff] }
 0x110   : > { %1658 = vst [vmem:[%s2494_s25 + $0x70] sm:$0xff] %v1594_v19  ;;  %1103 = vmatmul.f32.gmra.mxu3 %v455_v18  ;;  %v943_v20 = vpop.f32.mrf.mxu2  ;;  %v2603_v19 = vpop.permute.xlu0 %578 }
 0x111   : > { %v944_v26 = vadd.f32 %v943_v20, %v831_v17 }
 0x112   : > { %v720_v29 = vpop.f32.mrf.mxu0  ;;  %663 = vperm.xlu2 %1924, %v513_v62   ;;  %v1925_v62 = vld [vmem:[#allocation5] sm:$0xff] }
 0x113   : > { %v1056_v33 = vpop.f32.mrf.mxu3  ;;  %v721_v34 = vadd.f32 %v720_v29, %v2556_v21 }
 0x114   : > { %v1057_v35 = vadd.f32 %v1056_v33, %v944_v26  ;;  %v833_v36 = vpop.f32.mrf.mxu1  ;;  %v2610_v26 = vld [vmem:[#allocation5 + $0x390] sm:$0xff] }
 0x115   : > { %v834_v38 = vadd.f32 %v833_v36, %v721_v34  ;;  %767 = vmatmul.f32.gmra.mxu0 %v456_v30  ;;  %993 = vmatmul.f32.gmra.mxu2 %v458_v32  ;;  %v2613_v32 = vld [vmem:[#allocation5 + $0x388] sm:$0xff]  ;;  %v2617_v34 = vld [vmem:[#allocation5 + $0x398] sm:$0xff] }
 0x116   : > { %v1596_v41 = vmax.f32 %v1057_v35, 0.0 }
 0x117   : > { %880 = vmatmul.f32.gmra.mxu1 %v457_v37  ;;  %v2622_v37 = vpop.permute.xlu1 %583 }
 0x118   : > { %1660 = vst [vmem:[%s2494_s25 + $0x80] sm:$0xff] %v1596_v41  ;;  %1106 = vmatmul.f32.gmra.mxu3 %v459_v40  ;;  %v946_v42 = vpop.f32.mrf.mxu2  ;;  %v515_v40 = vld [vmem:[%s2868_s2 + $0xf8] sm:$0xff] }
 0x119   : > { %v947_v44 = vadd.f32 %v946_v42, %v834_v38  ;;  %v2627_v42 = vld [vmem:[#allocation5 + $0x3a0] sm:$0xff]  ;;  %673 = vperm.xlu1 %1923, %v515_v40  }
 0x11a   : > { %v723_v46 = vpop.f32.mrf.mxu0 }
 0x11b   : > { %v1059_v50 = vpop.f32.mrf.mxu3  ;;  %v724_v51 = vadd.f32 %v723_v46, %v2567_v43 }
 0x11c   : > { %v1060_v52 = vadd.f32 %v1059_v50, %v947_v44  ;;  %v836_v53 = vpop.f32.mrf.mxu1  ;;  %v2629_v44 = vld [vmem:[#allocation5 + $0x3b0] sm:$0xff]  ;;  %v2632_v50 = vld [vmem:[#allocation5 + $0x3a8] sm:$0xff] }
 0x11d   : > { %v837_v55 = vadd.f32 %v836_v53, %v724_v51  ;;  %770 = vmatmul.f32.gmra.mxu0 %v460_v48  ;;  %996 = vmatmul.f32.gmra.mxu2 %v462_v49 }
 0x11e   : > { %v1598_v59 = vmax.f32 %v1060_v52, 0.0  ;;  %v2636_v52 = vld [vmem:[#allocation5 + $0x3b8] sm:$0xff] }
 0x11f   : > { %883 = vmatmul.f32.gmra.mxu1 %v2573_v54 }
 0x120   : > { %1662 = vst [vmem:[%s2494_s25 + $0x90] sm:$0xff] %v1598_v59  ;;  %1109 = vmatmul.f32.gmra.mxu3 %v2575_v56  ;;  %v949_v60 = vpop.f32.mrf.mxu2  ;;  %v2641_v59 = vpop.permute.xlu2 %588 }
 0x121   : > { %v950_v1 = vadd.f32 %v949_v60, %v837_v55 }
 0x122   : > { %v726_v6 = vpop.f32.mrf.mxu0 }
 0x123   : > { %v1062_v9 = vpop.f32.mrf.mxu3  ;;  %v727_v10 = vadd.f32 %v726_v6, %v2580_v61 }
 0x124   : > { %v1063_v12 = vadd.f32 %v1062_v9, %v950_v1  ;;  %v839_v13 = vpop.f32.mrf.mxu1  ;;  %v2648_v1 = vld [vmem:[#allocation5 + $0x3d0] sm:$0xff] }
 0x125   : > { %v840_v15 = vadd.f32 %v839_v13, %v727_v10  ;;  %773 = vmatmul.f32.gmra.mxu0 %v2589_v7  ;;  %999 = vmatmul.f32.gmra.mxu2 %v2591_v8  ;;  %v2651_v10 = vld [vmem:[#allocation5 + $0x3c8] sm:$0xff]  ;;  %v2655_v13 = vld [vmem:[#allocation5 + $0x3d8] sm:$0xff] }
 0x126   : > { %v1600_v17 = vmax.f32 %v1063_v12, 0.0 }
 0x127   : > { %886 = vmatmul.f32.gmra.mxu1 %v2594_v14 }
 0x128   : > { %1664 = vst [vmem:[%s2494_s25 + $0xa0] sm:$0xff] %v1600_v17  ;;  %1112 = vmatmul.f32.gmra.mxu3 %v2598_v16  ;;  %v952_v18 = vpop.f32.mrf.mxu2 }
 0x129   : > { %v953_v20 = vadd.f32 %v952_v18, %v840_v15  ;;  %v2660_v18 = vpop.permute.xlu0 %593 }
 0x12a   : > { %v729_v24 = vpop.f32.mrf.mxu0 }
 0x12b   : > { %v1065_v27 = vpop.f32.mrf.mxu3  ;;  %v730_v28 = vadd.f32 %v729_v24, %v2603_v19  ;;  %v2662_v24 = vld [vmem:[#allocation5 + $0x3e0] sm:$0xff] }
 0x12c   : > { %v1066_v29 = vadd.f32 %v1065_v27, %v953_v20  ;;  %v842_v30 = vpop.f32.mrf.mxu1  ;;  %v2664_v27 = vld [vmem:[#allocation5 + $0x3f0] sm:$0xff] }
 0x12d   : > { %v843_v33 = vadd.f32 %v842_v30, %v730_v28  ;;  %776 = vmatmul.f32.gmra.mxu0 %v2608_v25  ;;  %1002 = vmatmul.f32.gmra.mxu2 %v2610_v26 }
 0x12e   : > { %v1602_v35 = vmax.f32 %v1066_v29, 0.0 }
 0x12f   : > { %889 = vmatmul.f32.gmra.mxu1 %v2613_v32 }
 0x130   : > { %1666 = vst [vmem:[%s2494_s25 + $0xb0] sm:$0xff] %v1602_v35  ;;  %1115 = vmatmul.f32.gmra.mxu3 %v2617_v34  ;;  %v955_v36 = vpop.f32.mrf.mxu2  ;;  %v2667_v35 = vld [vmem:[#allocation5 + $0x3e8] sm:$0xff] }
 0x131   : > { %v956_v38 = vadd.f32 %v955_v36, %v843_v33 }
 0x132   : > { %v732_v41 = vpop.f32.mrf.mxu0 }
 0x133   : > { %v1068_v45 = vpop.f32.mrf.mxu3  ;;  %v733_v46 = vadd.f32 %v732_v41, %v2622_v37 }
 0x134   : > { %v1069_v48 = vadd.f32 %v1068_v45, %v956_v38  ;;  %v845_v49 = vpop.f32.mrf.mxu1  ;;  %v2671_v38 = vld [vmem:[#allocation5 + $0x3f8] sm:$0xff]  ;;  %v2676_v45 = vpop.permute.xlu1 %598 }
 0x135   : > { %v846_v51 = vadd.f32 %v845_v49, %v733_v46  ;;  %779 = vmatmul.f32.gmra.mxu0 %v2627_v42  ;;  %1005 = vmatmul.f32.gmra.mxu2 %v2629_v44 }
 0x136   : > { %v1604_v53 = vmax.f32 %v1069_v48, 0.0 }
 0x137   : > { %892 = vmatmul.f32.gmra.mxu1 %v2632_v50 }
 0x138   : > { %1668 = vst [vmem:[%s2494_s25 + $0xc0] sm:$0xff] %v1604_v53  ;;  %1118 = vmatmul.f32.gmra.mxu3 %v2636_v52  ;;  %v958_v55 = vpop.f32.mrf.mxu2 }
 0x139   : > { %v959_v60 = vadd.f32 %v958_v55, %v846_v51 }
 0x13a   : > { %v735_v63 = vpop.f32.mrf.mxu0 }
 0x13b   : > { %v1071_v2 = vpop.f32.mrf.mxu3  ;;  %v736_v3 = vadd.f32 %v735_v63, %v2641_v59  ;;  %v1926_v63 = vld [vmem:[#allocation5 + $0x10] sm:$0xff] }
 0x13c   : > { %v1072_v6 = vadd.f32 %v1071_v2, %v959_v60  ;;  %v848_v9 = vpop.f32.mrf.mxu1 }
 0x13d   : > { %v849_v12 = vadd.f32 %v848_v9, %v736_v3  ;;  %782 = vmatmul.f32.gmra.mxu0 %v2646_v0  ;;  %1008 = vmatmul.f32.gmra.mxu2 %v2648_v1  ;;  %v1927_v3 = vld [vmem:[#allocation5 + $0x8] sm:$0xff] }
 0x13e   : > { %v1606_v15 = vmax.f32 %v1072_v6, 0.0  ;;  %v1928_v6 = vld [vmem:[#allocation5 + $0x18] sm:$0xff] }
 0x13f   : > { %895 = vmatmul.f32.gmra.mxu1 %v2651_v10 }
 0x140   : > { %1670 = vst [vmem:[%s2494_s25 + $0xd0] sm:$0xff] %v1606_v15  ;;  %1121 = vmatmul.f32.gmra.mxu3 %v2655_v13  ;;  %v961_v17 = vpop.f32.mrf.mxu2 }
 0x141   : > { %v962_v20 = vadd.f32 %v961_v17, %v849_v12  ;;  %v2680_v12 = vpop.permute.xlu2 %603 }
 0x142   : > { %v738_v22 = vpop.f32.mrf.mxu0 }
 0x143   : > { %v1074_v28 = vpop.f32.mrf.mxu3  ;;  %v739_v29 = vadd.f32 %v738_v22, %v2660_v18 }
 0x144   : > { %v1075_v30 = vadd.f32 %v1074_v28, %v962_v20  ;;  %v851_v33 = vpop.f32.mrf.mxu1 }
 0x145   : > { %v852_v36 = vadd.f32 %v851_v33, %v739_v29  ;;  %785 = vmatmul.f32.gmra.mxu0 %v2662_v24  ;;  %1011 = vmatmul.f32.gmra.mxu2 %v2664_v27  ;;  %v1929_v33 = vld [vmem:[#allocation5 + $0x20] sm:$0xff] }
 0x146   : > { %v1608_v40 = vmax.f32 %v1075_v30, 0.0 }
 0x147   : > { %898 = vmatmul.f32.gmra.mxu1 %v2667_v35 }
 0x148   : > { %1672 = vst [vmem:[%s2494_s25 + $0xe0] sm:$0xff] %v1608_v40  ;;  %1124 = vmatmul.f32.gmra.mxu3 %v2671_v38  ;;  %v964_v41 = vpop.f32.mrf.mxu2 }
 0x149   : > { %v965_v46 = vadd.f32 %v964_v41, %v852_v36  ;;  %v1930_v36 = vld [vmem:[#allocation5 + $0x30] sm:$0xff]  ;;  %v1931_v41 = vld [vmem:[#allocation5 + $0x28] sm:$0xff] }
 0x14a   : > { %v741_v48 = vpop.f32.mrf.mxu0 }
 0x14b   : > { %v1077_v49 = vpop.f32.mrf.mxu3  ;;  %v742_v51 = vadd.f32 %v741_v48, %v2676_v45 }
 0x14c   : > { %v1078_v53 = vadd.f32 %v1077_v49, %v965_v46  ;;  %v854_v55 = vpop.f32.mrf.mxu1  ;;  %v1932_v46 = vld [vmem:[#allocation5 + $0x38] sm:$0xff]  ;;  %v2684_v49 = vpop.permute.xlu0 %608 }
 0x14d   : > { %v855_v60 = vadd.f32 %v854_v55, %v742_v51  ;;  %1144 = vmatmul.f32.vlgmr.msrb.gmra.mxu0 %v1925_v62  ;;  %1370 = vmatmul.f32.vlgmr.msrb.gmra.mxu2 %v1926_v63 }
 0x14e   : > { %v1610_v2 = vmax.f32 %v1078_v53, 0.0 }
 0x14f   : > { %1257 = vmatmul.f32.vlgmr.msrb.gmra.mxu1 %v1927_v3  ;;  %v1933_v3 = vld [vmem:[#allocation5 + $0x40] sm:$0xff] }
 0x150   : > { %1674 = vst [vmem:[%s2494_s25 + $0xf0] sm:$0xff] %v1610_v2  ;;  %1483 = vmatmul.f32.vlgmr.msrb.gmra.mxu3 %v1928_v6  ;;  %v967_v9 = vpop.f32.mrf.mxu2  ;;  %v1934_v6 = vld [vmem:[#allocation5 + $0x50] sm:$0xff] }
 0x151   : > { %v968_v15 = vadd.f32 %v967_v9, %v855_v60 }
 0x152   : > { %v744_v17 = vpop.f32.mrf.mxu0 }
 0x153   : > { %v1080_v20 = vpop.f32.mrf.mxu3  ;;  %v745_v22 = vadd.f32 %v744_v17, %v2680_v12  ;;  %v1936_v17 = vld [vmem:[#allocation5 + $0x58] sm:$0xff] }
 0x154   : > { %v1081_v28 = vadd.f32 %v1080_v20, %v968_v15  ;;  %v857_v29 = vpop.f32.mrf.mxu1  ;;  %v1935_v15 = vld [vmem:[#allocation5 + $0x48] sm:$0xff] }
 0x155   : > { %v858_v30 = vadd.f32 %v857_v29, %v745_v22  ;;  %1147 = vmatmul.f32.gmra.mxu0 %v1929_v33  ;;  %1373 = vmatmul.f32.gmra.mxu2 %v1930_v36  ;;  %v2688_v22 = vpop.permute.xlu1 %613 }
 0x156   : > { %v1612_v40 = vmax.f32 %v1081_v28, 0.0 }
 0x157   : > { %1260 = vmatmul.f32.gmra.mxu1 %v1931_v41 }
 0x158   : > { %1676 = vst [vmem:[%s2494_s25 + $0x100] sm:$0xff] %v1612_v40  ;;  %1486 = vmatmul.f32.gmra.mxu3 %v1932_v46  ;;  %v970_v48 = vpop.f32.mrf.mxu2  ;;  %v1937_v46 = vld [vmem:[#allocation5 + $0x60] sm:$0xff] }
 0x159   : > { %v971_v51 = vadd.f32 %v970_v48, %v858_v30  ;;  %v1938_v48 = vld [vmem:[#allocation5 + $0x70] sm:$0xff] }
 0x15a   : > { %v747_v53 = vpop.f32.mrf.mxu0 }
 0x15b   : > { %v1083_v55 = vpop.f32.mrf.mxu3  ;;  %v748_v60 = vadd.f32 %v747_v53, %v2684_v49  ;;  %v1939_v53 = vld [vmem:[#allocation5 + $0x68] sm:$0xff] }
 0x15c   : > { %v1084_v62 = vadd.f32 %v1083_v55, %v971_v51  ;;  %v860_v63 = vpop.f32.mrf.mxu1  ;;  %v1940_v55 = vld [vmem:[#allocation5 + $0x78] sm:$0xff] }
 0x15d   : > { %v861_v2 = vadd.f32 %v860_v63, %v748_v60  ;;  %1150 = vmatmul.f32.gmra.mxu0 %v1933_v3  ;;  %1376 = vmatmul.f32.gmra.mxu2 %v1934_v6 }
 0x15e   : > { %v1614_v9 = vmax.f32 %v1084_v62, 0.0  ;;  %v2692_v62 = vpop.permute.xlu2 %618 }
 0x15f   : > { %1263 = vmatmul.f32.gmra.mxu1 %v1935_v15 }
 0x160   : > { %1678 = vst [vmem:[%s2494_s25 + $0x110] sm:$0xff] %v1614_v9  ;;  %1489 = vmatmul.f32.gmra.mxu3 %v1936_v17  ;;  %v973_v20 = vpop.f32.mrf.mxu2 }
 0x161   : > { %v974_v28 = vadd.f32 %v973_v20, %v861_v2  ;;  %v1941_v20 = vld [vmem:[#allocation5 + $0x80] sm:$0xff] }
 0x162   : > { %v750_v29 = vpop.f32.mrf.mxu0 }
 0x163   : > { %v1086_v30 = vpop.f32.mrf.mxu3  ;;  %v751_v33 = vadd.f32 %v750_v29, %v2688_v22 }
 0x164   : > { %v1087_v36 = vadd.f32 %v1086_v30, %v974_v28  ;;  %v863_v40 = vpop.f32.mrf.mxu1  ;;  %v1942_v28 = vld [vmem:[#allocation5 + $0x90] sm:$0xff]  ;;  %v1943_v30 = vld [vmem:[#allocation5 + $0x88] sm:$0xff] }
 0x165   : > { %v864_v41 = vadd.f32 %v863_v40, %v751_v33  ;;  %1153 = vmatmul.f32.gmra.mxu0 %v1937_v46  ;;  %1379 = vmatmul.f32.gmra.mxu2 %v1938_v48  ;;  %v1944_v33 = vld [vmem:[#allocation5 + $0x98] sm:$0xff]  ;;  %v2696_v40 = vpop.permute.xlu0 %623 }
 0x166   : > { %v1616_v51 = vmax.f32 %v1087_v36, 0.0 }
 0x167   : > { %1266 = vmatmul.f32.gmra.mxu1 %v1939_v53 }
 0x168   : > { %1680 = vst [vmem:[%s2494_s25 + $0x120] sm:$0xff] %v1616_v51  ;;  %1492 = vmatmul.f32.gmra.mxu3 %v1940_v55  ;;  %v976_v60 = vpop.f32.mrf.mxu2 }
 0x169   : > { %v977_v63 = vadd.f32 %v976_v60, %v864_v41 }
 0x16a   : > { %v753_v2 = vpop.f32.mrf.mxu0 }
 0x16b   : > { %v1089_v3 = vpop.f32.mrf.mxu3  ;;  %v754_v6 = vadd.f32 %v753_v2, %v2692_v62  ;;  %v1946_v2 = vld [vmem:[#allocation5 + $0xb0] sm:$0xff] }
 0x16c   : > { %v1090_v9 = vadd.f32 %v1089_v3, %v977_v63  ;;  %v866_v15 = vpop.f32.mrf.mxu1  ;;  %v1945_v63 = vld [vmem:[#allocation5 + $0xa0] sm:$0xff] }
 0x16d   : > { %v867_v17 = vadd.f32 %v866_v15, %v754_v6  ;;  %1156 = vmatmul.f32.gmra.mxu0 %v1941_v20  ;;  %1382 = vmatmul.f32.gmra.mxu2 %v1942_v28  ;;  %v1947_v6 = vld [vmem:[#allocation5 + $0xa8] sm:$0xff] }
 0x16e   : > { %v1618_v29 = vmax.f32 %v1090_v9, 0.0  ;;  %v1948_v9 = vld [vmem:[#allocation5 + $0xb8] sm:$0xff] }
 0x16f   : > { %1269 = vmatmul.f32.gmra.mxu1 %v1943_v30 }
 0x170   : > { %1682 = vst [vmem:[%s2494_s25 + $0x130] sm:$0xff] %v1618_v29  ;;  %1495 = vmatmul.f32.gmra.mxu3 %v1944_v33  ;;  %v979_v36 = vpop.f32.mrf.mxu2 }
 0x171   : > { %v980_v41 = vadd.f32 %v979_v36, %v867_v17  ;;  %v2700_v17 = vpop.permute.xlu1 %628 }
 0x172   : > { %v756_v46 = vpop.f32.mrf.mxu0 }
 0x173   : > { %v1092_v48 = vpop.f32.mrf.mxu3  ;;  %v757_v51 = vadd.f32 %v756_v46, %v2696_v40  ;;  %v1949_v46 = vld [vmem:[#allocation5 + $0xc0] sm:$0xff] }
 0x174   : > { %v1093_v53 = vadd.f32 %v1092_v48, %v980_v41  ;;  %v869_v55 = vpop.f32.mrf.mxu1  ;;  %v1950_v48 = vld [vmem:[#allocation5 + $0xd0] sm:$0xff] }
 0x175   : > { %v870_v60 = vadd.f32 %v869_v55, %v757_v51  ;;  %1159 = vmatmul.f32.gmra.mxu0 %v1945_v63  ;;  %1385 = vmatmul.f32.gmra.mxu2 %v1946_v2  ;;  %v1952_v55 = vld [vmem:[#allocation5 + $0xd8] sm:$0xff] }
 0x176   : > { %v1620_v3 = vmax.f32 %v1093_v53, 0.0  ;;  %v1951_v53 = vld [vmem:[#allocation5 + $0xc8] sm:$0xff] }
 0x177   : > { %1272 = vmatmul.f32.gmra.mxu1 %v1947_v6 }
 0x178   : > { %1684 = vst [vmem:[%s2494_s25 + $0x140] sm:$0xff] %v1620_v3  ;;  %1498 = vmatmul.f32.gmra.mxu3 %v1948_v9  ;;  %v982_v15 = vpop.f32.mrf.mxu2 }
 0x179   : > { %v983_v20 = vadd.f32 %v982_v15, %v870_v60  ;;  %v2704_v60 = vpop.permute.xlu2 %633 }
 0x17a   : > { %v759_v28 = vpop.f32.mrf.mxu0 }
 0x17b   : > { %v1095_v29 = vpop.f32.mrf.mxu3  ;;  %v760_v30 = vadd.f32 %v759_v28, %v2700_v17 }
 0x17c   : > { %v1096_v33 = vadd.f32 %v1095_v29, %v983_v20  ;;  %v872_v36 = vpop.f32.mrf.mxu1  ;;  %v1953_v29 = vld [vmem:[#allocation5 + $0xe0] sm:$0xff] }
 0x17d   : > { %v873_v41 = vadd.f32 %v872_v36, %v760_v30  ;;  %1162 = vmatmul.f32.gmra.mxu0 %v1949_v46  ;;  %1388 = vmatmul.f32.gmra.mxu2 %v1950_v48  ;;  %v1954_v30 = vld [vmem:[#allocation5 + $0xf0] sm:$0xff]  ;;  %v1955_v36 = vld [vmem:[#allocation5 + $0xe8] sm:$0xff]  ;;  %v1956_v46 = vld [vmem:[#allocation5 + $0xf8] sm:$0xff] }
 0x17e   : > { %v1622_v51 = vmax.f32 %v1096_v33, 0.0 }
 0x17f   : > { %1275 = vmatmul.f32.gmra.mxu1 %v1951_v53 }
 0x180   : > { %1686 = vst [vmem:[%s2494_s25 + $0x150] sm:$0xff] %v1622_v51  ;;  %1501 = vmatmul.f32.gmra.mxu3 %v1952_v55  ;;  %v985_v63 = vpop.f32.mrf.mxu2 }
 0x181   : > { %v986_v2 = vadd.f32 %v985_v63, %v873_v41  ;;  %v2708_v41 = vpop.permute.xlu0 %638 }
 0x182   : > { %v762_v3 = vpop.f32.mrf.mxu0 }
 0x183   : > { %v1098_v6 = vpop.f32.mrf.mxu3  ;;  %v763_v9 = vadd.f32 %v762_v3, %v2704_v60 }
 0x184   : > { %v1099_v15 = vadd.f32 %v1098_v6, %v986_v2  ;;  %v875_v20 = vpop.f32.mrf.mxu1 }
 0x185   : > { %v876_v28 = vadd.f32 %v875_v20, %v763_v9  ;;  %1165 = vmatmul.f32.gmra.mxu0 %v1953_v29  ;;  %1391 = vmatmul.f32.gmra.mxu2 %v1954_v30  ;;  %v1957_v9 = vld [vmem:[#allocation5 + $0x100] sm:$0xff]  ;;  %v1959_v29 = vld [vmem:[#allocation5 + $0x108] sm:$0xff]  ;;  %v1960_v30 = vld [vmem:[#allocation5 + $0x118] sm:$0xff] }
 0x186   : > { %v1624_v33 = vmax.f32 %v1099_v15, 0.0  ;;  %v1958_v15 = vld [vmem:[#allocation5 + $0x110] sm:$0xff] }
 0x187   : > { %1278 = vmatmul.f32.gmra.mxu1 %v1955_v36 }
 0x188   : > { %1688 = vst [vmem:[%s2494_s25 + $0x160] sm:$0xff] %v1624_v33  ;;  %1504 = vmatmul.f32.gmra.mxu3 %v1956_v46  ;;  %v988_v48 = vpop.f32.mrf.mxu2 }
 0x189   : > { %v989_v51 = vadd.f32 %v988_v48, %v876_v28  ;;  %v2712_v28 = vpop.permute.xlu1 %643 }
 0x18a   : > { %v765_v53 = vpop.f32.mrf.mxu0  ;;  %2885 = vst [vmem:[#allocation11_spill] sm:$0xff] %v2712_v28 }
 0x18b   : > { %v1101_v55 = vpop.f32.mrf.mxu3  ;;  %v766_v63 = vadd.f32 %v765_v53, %v2708_v41 }
 0x18c   : > { %v1102_v2 = vadd.f32 %v1101_v55, %v989_v51  ;;  %v878_v3 = vpop.f32.mrf.mxu1 }
 0x18d   : > { %v879_v6 = vadd.f32 %v878_v3, %v766_v63  ;;  %1168 = vmatmul.f32.gmra.mxu0 %v1957_v9  ;;  %1394 = vmatmul.f32.gmra.mxu2 %v1958_v15  ;;  %v1961_v3 = vld [vmem:[#allocation5 + $0x120] sm:$0xff]  ;;  %v1963_v15 = vld [vmem:[#allocation5 + $0x128] sm:$0xff] }
 0x18e   : > { %v1626_v20 = vmax.f32 %v1102_v2, 0.0  ;;  %v1962_v2 = vld [vmem:[#allocation5 + $0x130] sm:$0xff] }
 0x18f   : > { %1281 = vmatmul.f32.gmra.mxu1 %v1959_v29 }
 0x190   : > { %1690 = vst [vmem:[%s2494_s25 + $0x170] sm:$0xff] %v1626_v20  ;;  %1507 = vmatmul.f32.gmra.mxu3 %v1960_v30  ;;  %v991_v33 = vpop.f32.mrf.mxu2  ;;  %v1964_v20 = vld [vmem:[#allocation5 + $0x138] sm:$0xff] }
 0x191   : > { %v992_v36 = vadd.f32 %v991_v33, %v879_v6  ;;  %v2716_v6 = vpop.permute.xlu2 %648 }
 0x192   : > { %v768_v46 = vpop.f32.mrf.mxu0  ;;  %2886 = vst [vmem:[#allocation12_spill] sm:$0xff] %v2716_v6 }
 0x193   : > { %v1104_v48 = vpop.f32.mrf.mxu3  ;;  %v769_v51 = vadd.f32 %v768_v46, %v2712_v28 }
 0x194   : > { %v1105_v53 = vadd.f32 %v1104_v48, %v992_v36  ;;  %v881_v55 = vpop.f32.mrf.mxu1 }
 0x195   : > { %v882_v63 = vadd.f32 %v881_v55, %v769_v51  ;;  %1171 = vmatmul.f32.gmra.mxu0 %v1961_v3  ;;  %1397 = vmatmul.f32.gmra.mxu2 %v1962_v2  ;;  %v1965_v3 = vld [vmem:[#allocation5 + $0x140] sm:$0xff] }
 0x196   : > { %v1628_v9 = vmax.f32 %v1105_v53, 0.0  ;;  %v1966_v53 = vld [vmem:[#allocation5 + $0x150] sm:$0xff] }
 0x197   : > { %1284 = vmatmul.f32.gmra.mxu1 %v1963_v15  ;;  %v1968_v15 = vld [vmem:[#allocation5 + $0x158] sm:$0xff] }
 0x198   : > { %1692 = vst [vmem:[%s2494_s25 + $0x180] sm:$0xff] %v1628_v9  ;;  %1510 = vmatmul.f32.gmra.mxu3 %v1964_v20  ;;  %v994_v29 = vpop.f32.mrf.mxu2  ;;  %v1967_v9 = vld [vmem:[#allocation5 + $0x148] sm:$0xff] }
 0x199   : > { %v995_v30 = vadd.f32 %v994_v29, %v882_v63  ;;  %v2720_v63 = vpop.permute.xlu0 %653 }
 0x19a   : > { %v771_v33 = vpop.f32.mrf.mxu0  ;;  %2887 = vst [vmem:[#allocation13_spill] sm:$0xff] %v2720_v63 }
 0x19b   : > { %v1107_v46 = vpop.f32.mrf.mxu3  ;;  %v772_v36 = vadd.f32 %v771_v33, %v2716_v6 }
 0x19c   : > { %v1108_v48 = vadd.f32 %v1107_v46, %v995_v30  ;;  %v884_v51 = vpop.f32.mrf.mxu1 }
 0x19d   : > { %v885_v55 = vadd.f32 %v884_v51, %v772_v36  ;;  %1174 = vmatmul.f32.gmra.mxu0 %v1965_v3  ;;  %1400 = vmatmul.f32.gmra.mxu2 %v1966_v53  ;;  %v1969_v3 = vld [vmem:[#allocation5 + $0x160] sm:$0xff] }
 0x19e   : > { %v1630_v2 = vmax.f32 %v1108_v48, 0.0  ;;  %v1970_v48 = vld [vmem:[#allocation5 + $0x170] sm:$0xff] }
 0x19f   : > { %1287 = vmatmul.f32.gmra.mxu1 %v1967_v9  ;;  %v1972_v9 = vld [vmem:[#allocation5 + $0x178] sm:$0xff] }
 0x1a0   : > { %1694 = vst [vmem:[%s2494_s25 + $0x190] sm:$0xff] %v1630_v2  ;;  %1513 = vmatmul.f32.gmra.mxu3 %v1968_v15  ;;  %v997_v20 = vpop.f32.mrf.mxu2  ;;  %v1971_v2 = vld [vmem:[#allocation5 + $0x168] sm:$0xff] }
 0x1a1   : > { %v998_v29 = vadd.f32 %v997_v20, %v885_v55  ;;  %v2724_v55 = vpop.permute.xlu1 %658 }
 0x1a2   : > { %v774_v28 = vpop.f32.mrf.mxu0  ;;  %2888 = vst [vmem:[#allocation14_spill] sm:$0xff] %v2724_v55 }
 0x1a3   : > { %v1110_v33 = vpop.f32.mrf.mxu3  ;;  %v775_v30 = vadd.f32 %v774_v28, %v2720_v63 }
 0x1a4   : > { %v1111_v46 = vadd.f32 %v1110_v33, %v998_v29  ;;  %v887_v36 = vpop.f32.mrf.mxu1 }
 0x1a5   : > { %v888_v51 = vadd.f32 %v887_v36, %v775_v30  ;;  %1177 = vmatmul.f32.gmra.mxu0 %v1969_v3  ;;  %1403 = vmatmul.f32.gmra.mxu2 %v1970_v48  ;;  %v1973_v3 = vld [vmem:[#allocation5 + $0x180] sm:$0xff] }
 0x1a6   : > { %v1632_v53 = vmax.f32 %v1111_v46, 0.0  ;;  %v1974_v46 = vld [vmem:[#allocation5 + $0x190] sm:$0xff] }
 0x1a7   : > { %1290 = vmatmul.f32.gmra.mxu1 %v1971_v2  ;;  %v1976_v2 = vld [vmem:[#allocation5 + $0x198] sm:$0xff] }
 0x1a8   : > { %1696 = vst [vmem:[%s2494_s25 + $0x1a0] sm:$0xff] %v1632_v53  ;;  %1516 = vmatmul.f32.gmra.mxu3 %v1972_v9  ;;  %v1000_v15 = vpop.f32.mrf.mxu2  ;;  %v1975_v53 = vld [vmem:[#allocation5 + $0x188] sm:$0xff] }
 0x1a9   : > { %v1001_v20 = vadd.f32 %v1000_v15, %v888_v51  ;;  %v2728_v51 = vpop.permute.xlu2 %663 }
 0x1aa   : > { %v777_v6 = vpop.f32.mrf.mxu0  ;;  %2889 = vst [vmem:[#allocation15_spill] sm:$0xff] %v2728_v51 }
 0x1ab   : > { %v1113_v28 = vpop.f32.mrf.mxu3  ;;  %v778_v29 = vadd.f32 %v777_v6, %v2724_v55 }
 0x1ac   : > { %v1114_v33 = vadd.f32 %v1113_v28, %v1001_v20  ;;  %v890_v30 = vpop.f32.mrf.mxu1 }
 0x1ad   : > { %v891_v36 = vadd.f32 %v890_v30, %v778_v29  ;;  %1180 = vmatmul.f32.gmra.mxu0 %v1973_v3  ;;  %1406 = vmatmul.f32.gmra.mxu2 %v1974_v46  ;;  %v1977_v3 = vld [vmem:[#allocation5 + $0x1a0] sm:$0xff] }
 0x1ae   : > { %v1634_v48 = vmax.f32 %v1114_v33, 0.0  ;;  %v1978_v33 = vld [vmem:[#allocation5 + $0x1b0] sm:$0xff] }
 0x1af   : > { %1293 = vmatmul.f32.gmra.mxu1 %v1975_v53  ;;  %v1980_v53 = vld [vmem:[#allocation5 + $0x1b8] sm:$0xff] }
 0x1b0   : > { %1698 = vst [vmem:[%s2494_s25 + $0x1b0] sm:$0xff] %v1634_v48  ;;  %1519 = vmatmul.f32.gmra.mxu3 %v1976_v2  ;;  %v1003_v9 = vpop.f32.mrf.mxu2  ;;  %v1979_v48 = vld [vmem:[#allocation5 + $0x1a8] sm:$0xff] }
 0x1b1   : > { %v1004_v15 = vadd.f32 %v1003_v9, %v891_v36  ;;  %v2732_v36 = vpop.permute.xlu0 %668 }
 0x1b2   : > { %v780_v63 = vpop.f32.mrf.mxu0  ;;  %2890 = vst [vmem:[#allocation16_spill] sm:$0xff] %v2732_v36 }
 0x1b3   : > { %v1116_v6 = vpop.f32.mrf.mxu3  ;;  %v781_v20 = vadd.f32 %v780_v63, %v2728_v51 }
 0x1b4   : > { %v1117_v28 = vadd.f32 %v1116_v6, %v1004_v15  ;;  %v893_v29 = vpop.f32.mrf.mxu1 }
 0x1b5   : > { %v894_v30 = vadd.f32 %v893_v29, %v781_v20  ;;  %1183 = vmatmul.f32.gmra.mxu0 %v1977_v3  ;;  %1409 = vmatmul.f32.gmra.mxu2 %v1978_v33  ;;  %v1981_v3 = vld [vmem:[#allocation5 + $0x1c0] sm:$0xff] }
 0x1b6   : > { %v1636_v46 = vmax.f32 %v1117_v28, 0.0  ;;  %v1982_v28 = vld [vmem:[#allocation5 + $0x1d0] sm:$0xff] }
 0x1b7   : > { %1296 = vmatmul.f32.gmra.mxu1 %v1979_v48  ;;  %v1984_v48 = vld [vmem:[#allocation5 + $0x1d8] sm:$0xff] }
 0x1b8   : > { %1700 = vst [vmem:[%s2494_s25 + $0x1c0] sm:$0xff] %v1636_v46  ;;  %1522 = vmatmul.f32.gmra.mxu3 %v1980_v53  ;;  %v1006_v2 = vpop.f32.mrf.mxu2  ;;  %v1983_v46 = vld [vmem:[#allocation5 + $0x1c8] sm:$0xff] }
 0x1b9   : > { %v1007_v9 = vadd.f32 %v1006_v2, %v894_v30  ;;  %v2736_v30 = vpop.permute.xlu1 %673 }
 0x1ba   : > { %v783_v55 = vpop.f32.mrf.mxu0 }
 0x1bb   : > { %v1119_v63 = vpop.f32.mrf.mxu3  ;;  %v784_v15 = vadd.f32 %v783_v55, %v2732_v36 }
 0x1bc   : > { %v1120_v6 = vadd.f32 %v1119_v63, %v1007_v9  ;;  %v896_v20 = vpop.f32.mrf.mxu1 }
 0x1bd   : > { %v897_v29 = vadd.f32 %v896_v20, %v784_v15  ;;  %1186 = vmatmul.f32.gmra.mxu0 %v1981_v3  ;;  %1412 = vmatmul.f32.gmra.mxu2 %v1982_v28  ;;  %v1985_v3 = vld [vmem:[#allocation5 + $0x1e0] sm:$0xff] }
 0x1be   : > { %v1638_v33 = vmax.f32 %v1120_v6, 0.0  ;;  %v1986_v6 = vld [vmem:[#allocation5 + $0x1f0] sm:$0xff] }
 0x1bf   : > { %1299 = vmatmul.f32.gmra.mxu1 %v1983_v46  ;;  %v1988_v46 = vld [vmem:[#allocation5 + $0x1f8] sm:$0xff] }
 0x1c0   : > { %1702 = vst [vmem:[%s2494_s25 + $0x1d0] sm:$0xff] %v1638_v33  ;;  %1525 = vmatmul.f32.gmra.mxu3 %v1984_v48  ;;  %v1009_v53 = vpop.f32.mrf.mxu2  ;;  %v1987_v33 = vld [vmem:[#allocation5 + $0x1e8] sm:$0xff] }
 0x1c1   : > { %v1010_v2 = vadd.f32 %v1009_v53, %v897_v29 }
 0x1c2   : > { %v786_v51 = vpop.f32.mrf.mxu0 }
 0x1c3   : > { %v1122_v55 = vpop.f32.mrf.mxu3  ;;  %v787_v9 = vadd.f32 %v786_v51, %v2736_v30 }
 0x1c4   : > { %v1123_v63 = vadd.f32 %v1122_v55, %v1010_v2  ;;  %v899_v15 = vpop.f32.mrf.mxu1 }
 0x1c5   : > { %v900_v20 = vadd.f32 %v899_v15, %v787_v9  ;;  %1189 = vmatmul.f32.gmra.mxu0 %v1985_v3  ;;  %1415 = vmatmul.f32.gmra.mxu2 %v1986_v6  ;;  %v1989_v15 = vld [vmem:[#allocation5 + $0x200] sm:$0xff]  ;;  %v1990_v3 = vld [vmem:[#allocation5 + $0x210] sm:$0xff]  ;;  %v1991_v6 = vld [vmem:[#allocation5 + $0x208] sm:$0xff] }
 0x1c6   : > { %v1640_v28 = vmax.f32 %v1123_v63, 0.0 }
 0x1c7   : > { %1302 = vmatmul.f32.gmra.mxu1 %v1987_v33 }
 0x1c8   : > { %1704 = vst [vmem:[%s2494_s25 + $0x1e0] sm:$0xff] %v1640_v28  ;;  %1528 = vmatmul.f32.gmra.mxu3 %v1988_v46  ;;  %v1012_v48 = vpop.f32.mrf.mxu2  ;;  %v1992_v28 = vld [vmem:[#allocation5 + $0x218] sm:$0xff] }
 0x1c9   : > { %v1013_v29 = vadd.f32 %v1012_v48, %v900_v20 }
 0x1ca   : > { %v1145_v53 = vpop.f32.mrf.mxu0 }
 0x1cb   : > { %v1125_v36 = vpop.f32.mrf.mxu3  ;;  %v1146_v51 = vadd.f32 %v1145_v53, %v2475_v58 }
 0x1cc   : > { %v1126_v2 = vadd.f32 %v1125_v36, %v1013_v29  ;;  %v1258_v55 = vpop.f32.mrf.mxu1 }
 0x1cd   : > { %v1259_v9 = vadd.f32 %v1258_v55, %v1146_v51  ;;  %1192 = vmatmul.f32.gmra.mxu0 %v1989_v15  ;;  %1418 = vmatmul.f32.gmra.mxu2 %v1990_v3  ;;  %v1993_v51 = vld [vmem:[#allocation5 + $0x220] sm:$0xff]  ;;  %v1994_v55 = vld [vmem:[#allocation5 + $0x230] sm:$0xff]  ;;  %v1995_v15 = vld [vmem:[#allocation5 + $0x228] sm:$0xff] }
 0x1ce   : > { %v1642_v63 = vmax.f32 %v1126_v2, 0.0  ;;  %v1996_v3 = vld [vmem:[#allocation5 + $0x238] sm:$0xff] }
 0x1cf   : > { %1305 = vmatmul.f32.gmra.mxu1 %v1991_v6 }
 0x1d0   : > { %1706 = vst [vmem:[%s2494_s25 + $0x1f0] sm:$0xff] %v1642_v63  ;;  %1531 = vmatmul.f32.gmra.mxu3 %v1992_v28  ;;  %v1371_v33 = vpop.f32.mrf.mxu2 }
 0x1d1   : > { %v1372_v20 = vadd.f32 %v1371_v33, %v1259_v9 }
 0x1d2   : > { %v1148_v46 = vpop.f32.mrf.mxu0 }
 0x1d3   : > { %v1149_v48 = vadd.f32 %v1148_v46, %v2481_v5  ;;  %v1484_v58 = vpop.f32.mrf.mxu3 }
 0x1d4   : > { %v1485_v36 = vadd.f32 %v1484_v58, %v1372_v20  ;;  %v1261_v29 = vpop.f32.mrf.mxu1  ;;  %v1998_v58 = vld [vmem:[#allocation5 + $0x250] sm:$0xff] }
 0x1d5   : > { %v1262_v53 = vadd.f32 %v1261_v29, %v1149_v48  ;;  %1195 = vmatmul.f32.gmra.mxu0 %v1993_v51  ;;  %1421 = vmatmul.f32.gmra.mxu2 %v1994_v55  ;;  %v1997_v48 = vld [vmem:[#allocation5 + $0x240] sm:$0xff]  ;;  %v1999_v29 = vld [vmem:[#allocation5 + $0x248] sm:$0xff]  ;;  %v2000_v51 = vld [vmem:[#allocation5 + $0x258] sm:$0xff] }
 0x1d6   : > { %v1581_v2 = vmax.f32 %v1485_v36, 0.0 }
 0x1d7   : > { %1308 = vmatmul.f32.gmra.mxu1 %v1995_v15 }
 0x1d8   : > { %1645 = vst [vmem:[%s2494_s25 + $0x8] sm:$0xff] %v1581_v2  ;;  %1534 = vmatmul.f32.gmra.mxu3 %v1996_v3  ;;  %v1374_v63 = vpop.f32.mrf.mxu2 }
 0x1d9   : > { %v1375_v9 = vadd.f32 %v1374_v63, %v1262_v53 }
 0x1da   : > { %v1151_v6 = vpop.f32.mrf.mxu0 }
 0x1db   : > { %v1152_v5 = vadd.f32 %v1151_v6, %v2492_v23  ;;  %v1487_v28 = vpop.f32.mrf.mxu3  ;;  %v2001_v6 = vld [vmem:[#allocation5 + $0x260] sm:$0xff] }
 0x1dc   : > { %v1488_v33 = vadd.f32 %v1487_v28, %v1375_v9  ;;  %v1264_v20 = vpop.f32.mrf.mxu1 }
 0x1dd   : > { %v1265_v46 = vadd.f32 %v1264_v20, %v1152_v5  ;;  %1198 = vmatmul.f32.gmra.mxu0 %v1997_v48  ;;  %1424 = vmatmul.f32.gmra.mxu2 %v1998_v58  ;;  %v2002_v5 = vld [vmem:[#allocation5 + $0x270] sm:$0xff]  ;;  %v2004_v20 = vld [vmem:[#allocation5 + $0x278] sm:$0xff] }
 0x1de   : > { %v1583_v36 = vmax.f32 %v1488_v33, 0.0  ;;  %v2003_v33 = vld [vmem:[#allocation5 + $0x268] sm:$0xff] }
 0x1df   : > { %1311 = vmatmul.f32.gmra.mxu1 %v1999_v29 }
 0x1e0   : > { %1647 = vst [vmem:[%s2494_s25 + $0x18] sm:$0xff] %v1583_v36  ;;  %1537 = vmatmul.f32.gmra.mxu3 %v2000_v51  ;;  %v1377_v55 = vpop.f32.mrf.mxu2 }
 0x1e1   : > { %v1378_v53 = vadd.f32 %v1377_v55, %v1265_v46 }
 0x1e2   : > { %v1154_v2 = vpop.f32.mrf.mxu0 }
 0x1e3   : > { %v1155_v23 = vadd.f32 %v1154_v2, %v2502_v39  ;;  %v1490_v15 = vpop.f32.mrf.mxu3  ;;  %v2006_v2 = vld [vmem:[#allocation5 + $0x290] sm:$0xff] }
 0x1e4   : > { %v1491_v3 = vadd.f32 %v1490_v15, %v1378_v53  ;;  %v1267_v63 = vpop.f32.mrf.mxu1  ;;  %v2005_v53 = vld [vmem:[#allocation5 + $0x280] sm:$0xff]  ;;  %v2007_v15 = vld [vmem:[#allocation5 + $0x288] sm:$0xff] }
 0x1e5   : > { %v1268_v9 = vadd.f32 %v1267_v63, %v1155_v23  ;;  %1201 = vmatmul.f32.gmra.mxu0 %v2001_v6  ;;  %1427 = vmatmul.f32.gmra.mxu2 %v2002_v5 }
 0x1e6   : > { %v1585_v28 = vmax.f32 %v1491_v3, 0.0  ;;  %v2008_v3 = vld [vmem:[#allocation5 + $0x298] sm:$0xff] }
 0x1e7   : > { %1314 = vmatmul.f32.gmra.mxu1 %v2003_v33 }
 0x1e8   : > { %1649 = vst [vmem:[%s2494_s25 + $0x28] sm:$0xff] %v1585_v28  ;;  %1540 = vmatmul.f32.gmra.mxu3 %v2004_v20  ;;  %v1380_v48 = vpop.f32.mrf.mxu2 }
 0x1e9   : > { %v1381_v46 = vadd.f32 %v1380_v48, %v1268_v9  ;;  %v2009_v48 = vld [vmem:[#allocation5 + $0x2a0] sm:$0xff] }
 0x1ea   : > { %v1157_v58 = vpop.f32.mrf.mxu0 }
 0x1eb   : > { %v1158_v39 = vadd.f32 %v1157_v58, %v2512_v57  ;;  %v1493_v36 = vpop.f32.mrf.mxu3 }
 0x1ec   : > { %v1494_v29 = vadd.f32 %v1493_v36, %v1381_v46  ;;  %v1270_v51 = vpop.f32.mrf.mxu1  ;;  %v2010_v46 = vld [vmem:[#allocation5 + $0x2b0] sm:$0xff]  ;;  %v2012_v36 = vld [vmem:[#allocation5 + $0x2b8] sm:$0xff] }
 0x1ed   : > { %v1271_v55 = vadd.f32 %v1270_v51, %v1158_v39  ;;  %1204 = vmatmul.f32.gmra.mxu0 %v2005_v53  ;;  %1430 = vmatmul.f32.gmra.mxu2 %v2006_v2  ;;  %v2011_v39 = vld [vmem:[#allocation5 + $0x2a8] sm:$0xff] }
 0x1ee   : > { %v1587_v23 = vmax.f32 %v1494_v29, 0.0 }
 0x1ef   : > { %1317 = vmatmul.f32.gmra.mxu1 %v2007_v15 }
 0x1f0   : > { %1651 = vst [vmem:[%s2494_s25 + $0x38] sm:$0xff] %v1587_v23  ;;  %1543 = vmatmul.f32.gmra.mxu3 %v2008_v3  ;;  %v1383_v63 = vpop.f32.mrf.mxu2  ;;  %v2013_v3 = vld [vmem:[#allocation5 + $0x2c0] sm:$0xff] }
 0x1f1   : > { %v1384_v9 = vadd.f32 %v1383_v63, %v1271_v55  ;;  %v2014_v63 = vld [vmem:[#allocation5 + $0x2d0] sm:$0xff] }
 0x1f2   : > { %v1160_v6 = vpop.f32.mrf.mxu0 }
 0x1f3   : > { %v1161_v57 = vadd.f32 %v1160_v6, %v2520_v11  ;;  %v1496_v5 = vpop.f32.mrf.mxu3  ;;  %v2015_v6 = vld [vmem:[#allocation5 + $0x2c8] sm:$0xff] }
 0x1f4   : > { %v1497_v28 = vadd.f32 %v1496_v5, %v1384_v9  ;;  %v1273_v33 = vpop.f32.mrf.mxu1 }
 0x1f5   : > { %v1274_v20 = vadd.f32 %v1273_v33, %v1161_v57  ;;  %1207 = vmatmul.f32.gmra.mxu0 %v2009_v48  ;;  %1433 = vmatmul.f32.gmra.mxu2 %v2010_v46  ;;  %v2016_v57 = vld [vmem:[#allocation5 + $0x2d8] sm:$0xff] }
 0x1f6   : > { %v1589_v58 = vmax.f32 %v1497_v28, 0.0 }
 0x1f7   : > { %1320 = vmatmul.f32.gmra.mxu1 %v2011_v39  ;;  %v2017_v39 = vld [vmem:[#allocation5 + $0x2e0] sm:$0xff] }
 0x1f8   : > { %1653 = vst [vmem:[%s2494_s25 + $0x48] sm:$0xff] %v1589_v58  ;;  %1546 = vmatmul.f32.gmra.mxu3 %v2012_v36  ;;  %v1386_v29 = vpop.f32.mrf.mxu2  ;;  %v2018_v36 = vld [vmem:[#allocation5 + $0x2f0] sm:$0xff] }
 0x1f9   : > { %v1387_v51 = vadd.f32 %v1386_v29, %v1274_v20 }
 0x1fa   : > { %v1163_v55 = vpop.f32.mrf.mxu0 }
 0x1fb   : > { %v1164_v11 = vadd.f32 %v1163_v55, %v2531_v31  ;;  %v1499_v53 = vpop.f32.mrf.mxu3  ;;  %v2020_v55 = vld [vmem:[#allocation5 + $0x2f8] sm:$0xff] }
 0x1fc   : > { %v1500_v2 = vadd.f32 %v1499_v53, %v1387_v51  ;;  %v1276_v23 = vpop.f32.mrf.mxu1  ;;  %v2019_v51 = vld [vmem:[#allocation5 + $0x2e8] sm:$0xff] }
 0x1fd   : > { %v1277_v15 = vadd.f32 %v1276_v23, %v1164_v11  ;;  %1210 = vmatmul.f32.gmra.mxu0 %v2013_v3  ;;  %1436 = vmatmul.f32.gmra.mxu2 %v2014_v63 }
 0x1fe   : > { %v1591_v9 = vmax.f32 %v1500_v2, 0.0 }
 0x1ff   : > { %1323 = vmatmul.f32.gmra.mxu1 %v2015_v6  ;;  %v2022_v6 = vld [vmem:[#allocation5 + $0x310] sm:$0xff] }
 0x200   : > { %1655 = vst [vmem:[%s2494_s25 + $0x58] sm:$0xff] %v1591_v9  ;;  %1549 = vmatmul.f32.gmra.mxu3 %v2016_v57  ;;  %v1389_v5 = vpop.f32.mrf.mxu2  ;;  %v2021_v9 = vld [vmem:[#allocation5 + $0x300] sm:$0xff] }
 0x201   : > { %v1390_v28 = vadd.f32 %v1389_v5, %v1277_v15  ;;  %v2023_v5 = vld [vmem:[#allocation5 + $0x308] sm:$0xff] }
 0x202   : > { %v1166_v33 = vpop.f32.mrf.mxu0 }
 0x203   : > { %v1167_v31 = vadd.f32 %v1166_v33, %v2538_v47  ;;  %v1502_v20 = vpop.f32.mrf.mxu3 }
 0x204   : > { %v1503_v48 = vadd.f32 %v1502_v20, %v1390_v28  ;;  %v1279_v46 = vpop.f32.mrf.mxu1  ;;  %v2024_v28 = vld [vmem:[#allocation5 + $0x318] sm:$0xff] }
 0x205   : > { %v1280_v58 = vadd.f32 %v1279_v46, %v1167_v31  ;;  %1213 = vmatmul.f32.gmra.mxu0 %v2017_v39  ;;  %1439 = vmatmul.f32.gmra.mxu2 %v2018_v36  ;;  %v2025_v36 = vld [vmem:[#allocation5 + $0x320] sm:$0xff] }
 0x206   : > { %v1593_v29 = vmax.f32 %v1503_v48, 0.0 }
 0x207   : > { %1326 = vmatmul.f32.gmra.mxu1 %v2019_v51 }
 0x208   : > { %1657 = vst [vmem:[%s2494_s25 + $0x68] sm:$0xff] %v1593_v29  ;;  %1552 = vmatmul.f32.gmra.mxu3 %v2020_v55  ;;  %v1392_v11 = vpop.f32.mrf.mxu2  ;;  %v2026_v29 = vld [vmem:[#allocation5 + $0x330] sm:$0xff]  ;;  %v2027_v55 = vld [vmem:[#allocation5 + $0x328] sm:$0xff] }
 0x209   : > { %v1393_v53 = vadd.f32 %v1392_v11, %v1280_v58  ;;  %v2028_v11 = vld [vmem:[#allocation5 + $0x338] sm:$0xff] }
 0x20a   : > { %v1169_v2 = vpop.f32.mrf.mxu0 }
 0x20b   : > { %v1170_v47 = vadd.f32 %v1169_v2, %v2549_v4  ;;  %v1505_v23 = vpop.f32.mrf.mxu3 }
 0x20c   : > { %v1506_v15 = vadd.f32 %v1505_v23, %v1393_v53  ;;  %v1282_v3 = vpop.f32.mrf.mxu1 }
 0x20d   : > { %v1283_v63 = vadd.f32 %v1282_v3, %v1170_v47  ;;  %1216 = vmatmul.f32.gmra.mxu0 %v2021_v9  ;;  %1442 = vmatmul.f32.gmra.mxu2 %v2022_v6  ;;  %v2029_v9 = vld [vmem:[#allocation5 + $0x340] sm:$0xff]  ;;  %v2030_v6 = vld [vmem:[#allocation5 + $0x350] sm:$0xff] }
 0x20e   : > { %v1595_v57 = vmax.f32 %v1506_v15, 0.0 }
 0x20f   : > { %1329 = vmatmul.f32.gmra.mxu1 %v2023_v5 }
 0x210   : > { %1659 = vst [vmem:[%s2494_s25 + $0x78] sm:$0xff] %v1595_v57  ;;  %1555 = vmatmul.f32.gmra.mxu3 %v2024_v28  ;;  %v1395_v33 = vpop.f32.mrf.mxu2 }
 0x211   : > { %v1396_v31 = vadd.f32 %v1395_v33, %v1283_v63 }
 0x212   : > { %v1172_v20 = vpop.f32.mrf.mxu0 }
 0x213   : > { %v1173_v4 = vadd.f32 %v1172_v20, %v2556_v21  ;;  %v1508_v48 = vpop.f32.mrf.mxu3 }
 0x214   : > { %v1509_v46 = vadd.f32 %v1508_v48, %v1396_v31  ;;  %v1285_v58 = vpop.f32.mrf.mxu1 }
 0x215   : > { %v1286_v39 = vadd.f32 %v1285_v58, %v1173_v4  ;;  %1219 = vmatmul.f32.gmra.mxu0 %v2025_v36  ;;  %1445 = vmatmul.f32.gmra.mxu2 %v2026_v29 }
 0x216   : > { %v1597_v51 = vmax.f32 %v1509_v46, 0.0 }
 0x217   : > { %1332 = vmatmul.f32.gmra.mxu1 %v2027_v55 }
 0x218   : > { %1661 = vst [vmem:[%s2494_s25 + $0x88] sm:$0xff] %v1597_v51  ;;  %1558 = vmatmul.f32.gmra.mxu3 %v2028_v11  ;;  %v1398_v53 = vpop.f32.mrf.mxu2 }
 0x219   : > { %v1399_v2 = vadd.f32 %v1398_v53, %v1286_v39 }
 0x21a   : > { %v1175_v47 = vpop.f32.mrf.mxu0 }
 0x21b   : > { %v1176_v21 = vadd.f32 %v1175_v47, %v2567_v43  ;;  %v1511_v23 = vpop.f32.mrf.mxu3 }
 0x21c   : > { %v1512_v15 = vadd.f32 %v1511_v23, %v1399_v2  ;;  %v1288_v3 = vpop.f32.mrf.mxu1 }
 0x21d   : > { %v1289_v63 = vadd.f32 %v1288_v3, %v1176_v21  ;;  %1222 = vmatmul.f32.gmra.mxu0 %v2029_v9  ;;  %1448 = vmatmul.f32.gmra.mxu2 %v2030_v6 }
 0x21e   : > { %v1599_v57 = vmax.f32 %v1512_v15, 0.0 }
 0x21f   : > { %1335 = vmatmul.f32.gmra.mxu1 %v2573_v54 }
 0x220   : > { %1663 = vst [vmem:[%s2494_s25 + $0x98] sm:$0xff] %v1599_v57  ;;  %1561 = vmatmul.f32.gmra.mxu3 %v2575_v56  ;;  %v1401_v5 = vpop.f32.mrf.mxu2 }
 0x221   : > { %v1402_v28 = vadd.f32 %v1401_v5, %v1289_v63 }
 0x222   : > { %v1178_v33 = vpop.f32.mrf.mxu0 }
 0x223   : > { %v1179_v43 = vadd.f32 %v1178_v33, %v2580_v61  ;;  %v1514_v31 = vpop.f32.mrf.mxu3 }
 0x224   : > { %v1515_v20 = vadd.f32 %v1514_v31, %v1402_v28  ;;  %v1291_v4 = vpop.f32.mrf.mxu1 }
 0x225   : > { %v1292_v48 = vadd.f32 %v1291_v4, %v1179_v43  ;;  %1225 = vmatmul.f32.gmra.mxu0 %v2589_v7  ;;  %1451 = vmatmul.f32.gmra.mxu2 %v2591_v8 }
 0x226   : > { %v1601_v46 = vmax.f32 %v1515_v20, 0.0 }
 0x227   : > { %1338 = vmatmul.f32.gmra.mxu1 %v2594_v14 }
 0x228   : > { %1665 = vst [vmem:[%s2494_s25 + $0xa8] sm:$0xff] %v1601_v46  ;;  %1564 = vmatmul.f32.gmra.mxu3 %v2598_v16  ;;  %v1404_v54 = vpop.f32.mrf.mxu2 }
 0x229   : > { %v1405_v56 = vadd.f32 %v1404_v54, %v1292_v48 }
 0x22a   : > { %v1181_v58 = vpop.f32.mrf.mxu0 }
 0x22b   : > { %v1182_v61 = vadd.f32 %v1181_v58, %v2603_v19  ;;  %v1517_v39 = vpop.f32.mrf.mxu3 }
 0x22c   : > { %v1518_v36 = vadd.f32 %v1517_v39, %v1405_v56  ;;  %v1294_v29 = vpop.f32.mrf.mxu1 }
 0x22d   : > { %v1295_v51 = vadd.f32 %v1294_v29, %v1182_v61  ;;  %1228 = vmatmul.f32.gmra.mxu0 %v2608_v25  ;;  %1454 = vmatmul.f32.gmra.mxu2 %v2610_v26 }
 0x22e   : > { %v1603_v7 = vmax.f32 %v1518_v36, 0.0 }
 0x22f   : > { %1341 = vmatmul.f32.gmra.mxu1 %v2613_v32 }
 0x230   : > { %1667 = vst [vmem:[%s2494_s25 + $0xb8] sm:$0xff] %v1603_v7  ;;  %1567 = vmatmul.f32.gmra.mxu3 %v2617_v34  ;;  %v1407_v8 = vpop.f32.mrf.mxu2 }
 0x231   : > { %v1408_v14 = vadd.f32 %v1407_v8, %v1295_v51 }
 0x232   : > { %v1184_v16 = vpop.f32.mrf.mxu0 }
 0x233   : > { %v1185_v19 = vadd.f32 %v1184_v16, %v2622_v37  ;;  %v1520_v55 = vpop.f32.mrf.mxu3 }
 0x234   : > { %v1521_v11 = vadd.f32 %v1520_v55, %v1408_v14  ;;  %v1297_v53 = vpop.f32.mrf.mxu1 }
 0x235   : > { %v1298_v2 = vadd.f32 %v1297_v53, %v1185_v19  ;;  %1231 = vmatmul.f32.gmra.mxu0 %v2627_v42  ;;  %1457 = vmatmul.f32.gmra.mxu2 %v2629_v44 }
 0x236   : > { %v1605_v25 = vmax.f32 %v1521_v11, 0.0 }
 0x237   : > { %1344 = vmatmul.f32.gmra.mxu1 %v2632_v50 }
 0x238   : > { %1669 = vst [vmem:[%s2494_s25 + $0xc8] sm:$0xff] %v1605_v25  ;;  %1570 = vmatmul.f32.gmra.mxu3 %v2636_v52  ;;  %v1410_v26 = vpop.f32.mrf.mxu2 }
 0x239   : > { %v1411_v32 = vadd.f32 %v1410_v26, %v1298_v2 }
 0x23a   : > { %v1187_v34 = vpop.f32.mrf.mxu0 }
 0x23b   : > { %v1188_v37 = vadd.f32 %v1187_v34, %v2641_v59  ;;  %v1523_v47 = vpop.f32.mrf.mxu3 }
 0x23c   : > { %v1524_v21 = vadd.f32 %v1523_v47, %v1411_v32  ;;  %v1300_v23 = vpop.f32.mrf.mxu1 }
 0x23d   : > { %v1301_v15 = vadd.f32 %v1300_v23, %v1188_v37  ;;  %1234 = vmatmul.f32.gmra.mxu0 %v2646_v0  ;;  %1460 = vmatmul.f32.gmra.mxu2 %v2648_v1 }
 0x23e   : > { %v1607_v42 = vmax.f32 %v1524_v21, 0.0 }
 0x23f   : > { %1347 = vmatmul.f32.gmra.mxu1 %v2651_v10 }
 0x240   : > { %1671 = vst [vmem:[%s2494_s25 + $0xd8] sm:$0xff] %v1607_v42  ;;  %1573 = vmatmul.f32.gmra.mxu3 %v2655_v13  ;;  %v1413_v44 = vpop.f32.mrf.mxu2 }
 0x241   : > { %v1414_v50 = vadd.f32 %v1413_v44, %v1301_v15 }
 0x242   : > { %v1190_v52 = vpop.f32.mrf.mxu0 }
 0x243   : > { %v1191_v59 = vadd.f32 %v1190_v52, %v2660_v18  ;;  %v1526_v3 = vpop.f32.mrf.mxu3 }
 0x244   : > { %v1527_v63 = vadd.f32 %v1526_v3, %v1414_v50  ;;  %v1303_v9 = vpop.f32.mrf.mxu1 }
 0x245   : > { %v1304_v6 = vadd.f32 %v1303_v9, %v1191_v59  ;;  %1237 = vmatmul.f32.gmra.mxu0 %v2662_v24  ;;  %1463 = vmatmul.f32.gmra.mxu2 %v2664_v27 }
 0x246   : > { %v1609_v0 = vmax.f32 %v1527_v63, 0.0 }
 0x247   : > { %1350 = vmatmul.f32.gmra.mxu1 %v2667_v35 }
 0x248   : > { %1673 = vst [vmem:[%s2494_s25 + $0xe8] sm:$0xff] %v1609_v0  ;;  %1576 = vmatmul.f32.gmra.mxu3 %v2671_v38  ;;  %v1416_v1 = vpop.f32.mrf.mxu2 }
 0x249   : > { %v1417_v10 = vadd.f32 %v1416_v1, %v1304_v6 }
 0x24a   : > { %v1193_v13 = vpop.f32.mrf.mxu0 }
 0x24b   : > { %v1194_v18 = vadd.f32 %v1193_v13, %v2676_v45  ;;  %v1529_v57 = vpop.f32.mrf.mxu3 }
 0x24c   : > { %v1530_v5 = vadd.f32 %v1529_v57, %v1417_v10  ;;  %v1306_v28 = vpop.f32.mrf.mxu1 }
 0x24d   : > { %v1307_v33 = vadd.f32 %v1306_v28, %v1194_v18 }
 0x24e   : > { %v1611_v43 = vmax.f32 %v1530_v5, 0.0 }
 0x250   : > { %1675 = vst [vmem:[%s2494_s25 + $0xf8] sm:$0xff] %v1611_v43  ;;  %v1419_v24 = vpop.f32.mrf.mxu2 }
 0x251   : > { %v1420_v27 = vadd.f32 %v1419_v24, %v1307_v33 }
 0x252   : > { %v1196_v31 = vpop.f32.mrf.mxu0 }
 0x253   : > { %v1197_v35 = vadd.f32 %v1196_v31, %v2680_v12  ;;  %v1532_v20 = vpop.f32.mrf.mxu3 }
 0x254   : > { %v1533_v38 = vadd.f32 %v1532_v20, %v1420_v27  ;;  %v1309_v4 = vpop.f32.mrf.mxu1 }
 0x255   : > { %v1310_v48 = vadd.f32 %v1309_v4, %v1197_v35 }
 0x256   : > { %v1613_v46 = vmax.f32 %v1533_v38, 0.0 }
 0x258   : > { %1677 = vst [vmem:[%s2494_s25 + $0x108] sm:$0xff] %v1613_v46  ;;  %v1422_v45 = vpop.f32.mrf.mxu2 }
 0x259   : > { %v1423_v54 = vadd.f32 %v1422_v45, %v1310_v48 }
 0x25a   : > { %v1199_v56 = vpop.f32.mrf.mxu0 }
 0x25b   : > { %v1200_v58 = vadd.f32 %v1199_v56, %v2684_v49  ;;  %v1535_v61 = vpop.f32.mrf.mxu3 }
 0x25c   : > { %v1536_v39 = vadd.f32 %v1535_v61, %v1423_v54  ;;  %v1312_v36 = vpop.f32.mrf.mxu1  ;;  %v2891_v61 = vld [vmem:[#allocation11_spill] sm:$0xff] }
 0x25d   : > { %v1313_v29 = vadd.f32 %v1312_v36, %v1200_v58 }
 0x25e   : > { %v1615_v51 = vmax.f32 %v1536_v39, 0.0 }
 0x260   : > { %1679 = vst [vmem:[%s2494_s25 + $0x118] sm:$0xff] %v1615_v51  ;;  %v1425_v12 = vpop.f32.mrf.mxu2 }
 0x261   : > { %v1426_v7 = vadd.f32 %v1425_v12, %v1313_v29 }
 0x262   : > { %v1202_v8 = vpop.f32.mrf.mxu0 }
 0x263   : > { %v1203_v14 = vadd.f32 %v1202_v8, %v2688_v22  ;;  %v1538_v16 = vpop.f32.mrf.mxu3 }
 0x264   : > { %v1539_v19 = vadd.f32 %v1538_v16, %v1426_v7  ;;  %v1315_v55 = vpop.f32.mrf.mxu1  ;;  %v2892_v16 = vld [vmem:[#allocation12_spill] sm:$0xff] }
 0x265   : > { %v1316_v11 = vadd.f32 %v1315_v55, %v1203_v14 }
 0x266   : > { %v1617_v53 = vmax.f32 %v1539_v19, 0.0 }
 0x268   : > { %1681 = vst [vmem:[%s2494_s25 + $0x128] sm:$0xff] %v1617_v53  ;;  %v1428_v49 = vpop.f32.mrf.mxu2 }
 0x269   : > { %v1429_v2 = vadd.f32 %v1428_v49, %v1316_v11 }
 0x26a   : > { %v1205_v25 = vpop.f32.mrf.mxu0 }
 0x26b   : > { %v1206_v26 = vadd.f32 %v1205_v25, %v2692_v62  ;;  %v1541_v32 = vpop.f32.mrf.mxu3 }
 0x26c   : > { %v1542_v34 = vadd.f32 %v1541_v32, %v1429_v2  ;;  %v1318_v37 = vpop.f32.mrf.mxu1 }
 0x26d   : > { %v1319_v47 = vadd.f32 %v1318_v37, %v1206_v26 }
 0x26e   : > { %v1619_v21 = vmax.f32 %v1542_v34, 0.0  ;;  %v2893_v34 = vld [vmem:[#allocation13_spill] sm:$0xff] }
 0x270   : > { %1683 = vst [vmem:[%s2494_s25 + $0x138] sm:$0xff] %v1619_v21  ;;  %v1431_v22 = vpop.f32.mrf.mxu2 }
 0x271   : > { %v1432_v23 = vadd.f32 %v1431_v22, %v1319_v47 }
 0x272   : > { %v1208_v15 = vpop.f32.mrf.mxu0 }
 0x273   : > { %v1209_v42 = vadd.f32 %v1208_v15, %v2696_v40  ;;  %v1544_v44 = vpop.f32.mrf.mxu3 }
 0x274   : > { %v1545_v50 = vadd.f32 %v1544_v44, %v1432_v23  ;;  %v1321_v52 = vpop.f32.mrf.mxu1 }
 0x275   : > { %v1322_v59 = vadd.f32 %v1321_v52, %v1209_v42  ;;  %v2894_v52 = vld [vmem:[#allocation14_spill] sm:$0xff] }
 0x276   : > { %v1621_v3 = vmax.f32 %v1545_v50, 0.0 }
 0x278   : > { %1685 = vst [vmem:[%s2494_s25 + $0x148] sm:$0xff] %v1621_v3  ;;  %v1434_v62 = vpop.f32.mrf.mxu2 }
 0x279   : > { %v1435_v63 = vadd.f32 %v1434_v62, %v1322_v59 }
 0x27a   : > { %v1211_v9 = vpop.f32.mrf.mxu0 }
 0x27b   : > { %v1212_v6 = vadd.f32 %v1211_v9, %v2700_v17  ;;  %v1547_v0 = vpop.f32.mrf.mxu3 }
 0x27c   : > { %v1548_v1 = vadd.f32 %v1547_v0, %v1435_v63  ;;  %v1324_v10 = vpop.f32.mrf.mxu1 }
 0x27d   : > { %v1325_v18 = vadd.f32 %v1324_v10, %v1212_v6 }
 0x27e   : > { %v1623_v13 = vmax.f32 %v1548_v1, 0.0 }
 0x280   : > { %1687 = vst [vmem:[%s2494_s25 + $0x158] sm:$0xff] %v1623_v13  ;;  %v1437_v40 = vpop.f32.mrf.mxu2  ;;  %v2895_v13 = vld [vmem:[#allocation15_spill] sm:$0xff] }
 0x281   : > { %v1438_v57 = vadd.f32 %v1437_v40, %v1325_v18 }
 0x282   : > { %v1214_v5 = vpop.f32.mrf.mxu0 }
 0x283   : > { %v1215_v28 = vadd.f32 %v1214_v5, %v2704_v60  ;;  %v1550_v33 = vpop.f32.mrf.mxu3 }
 0x284   : > { %v1551_v43 = vadd.f32 %v1550_v33, %v1438_v57  ;;  %v1327_v24 = vpop.f32.mrf.mxu1 }
 0x285   : > { %v1328_v31 = vadd.f32 %v1327_v24, %v1215_v28 }
 0x286   : > { %v1625_v27 = vmax.f32 %v1551_v43, 0.0 }
 0x288   : > { %1689 = vst [vmem:[%s2494_s25 + $0x168] sm:$0xff] %v1625_v27  ;;  %v1440_v17 = vpop.f32.mrf.mxu2 }
 0x289   : > { %v1441_v35 = vadd.f32 %v1440_v17, %v1328_v31  ;;  %v2896_v31 = vld [vmem:[#allocation16_spill] sm:$0xff] }
 0x28a   : > { %v1217_v20 = vpop.f32.mrf.mxu0 }
 0x28b   : > { %v1218_v38 = vadd.f32 %v1217_v20, %v2708_v41  ;;  %v1553_v4 = vpop.f32.mrf.mxu3 }
 0x28c   : > { %v1554_v48 = vadd.f32 %v1553_v4, %v1441_v35  ;;  %v1330_v46 = vpop.f32.mrf.mxu1 }
 0x28d   : > { %v1331_v54 = vadd.f32 %v1330_v46, %v1218_v38 }
 0x28e   : > { %v1627_v45 = vmax.f32 %v1554_v48, 0.0 }
 0x290   : > { %1691 = vst [vmem:[%s2494_s25 + $0x178] sm:$0xff] %v1627_v45  ;;  %v1443_v60 = vpop.f32.mrf.mxu2 }
 0x291   : > { %v1444_v56 = vadd.f32 %v1443_v60, %v1331_v54 }
 0x292   : > { %v1220_v58 = vpop.f32.mrf.mxu0 }
 0x293   : > { %v1221_v39 = vadd.f32 %v1220_v58, %v2891_v61  ;;  %v1556_v36 = vpop.f32.mrf.mxu3 }
 0x294   : > { %v1557_v29 = vadd.f32 %v1556_v36, %v1444_v56  ;;  %v1333_v51 = vpop.f32.mrf.mxu1 }
 0x295   : > { %v1334_v7 = vadd.f32 %v1333_v51, %v1221_v39 }
 0x296   : > { %v1629_v12 = vmax.f32 %v1557_v29, 0.0 }
 0x298   : > { %1693 = vst [vmem:[%s2494_s25 + $0x188] sm:$0xff] %v1629_v12  ;;  %v1446_v41 = vpop.f32.mrf.mxu2 }
 0x299   : > { %v1447_v8 = vadd.f32 %v1446_v41, %v1334_v7 }
 0x29a   : > { %v1223_v14 = vpop.f32.mrf.mxu0 }
 0x29b   : > { %v1224_v19 = vadd.f32 %v1223_v14, %v2892_v16  ;;  %v1559_v55 = vpop.f32.mrf.mxu3 }
 0x29c   : > { %v1560_v11 = vadd.f32 %v1559_v55, %v1447_v8  ;;  %v1336_v53 = vpop.f32.mrf.mxu1 }
 0x29d   : > { %v1337_v2 = vadd.f32 %v1336_v53, %v1224_v19 }
 0x29e   : > { %v1631_v49 = vmax.f32 %v1560_v11, 0.0 }
 0x2a0   : > { %1695 = vst [vmem:[%s2494_s25 + $0x198] sm:$0xff] %v1631_v49  ;;  %v1449_v25 = vpop.f32.mrf.mxu2 }
 0x2a1   : > { %v1450_v26 = vadd.f32 %v1449_v25, %v1337_v2 }
 0x2a2   : > { %v1226_v32 = vpop.f32.mrf.mxu0 }
 0x2a3   : > { %v1227_v37 = vadd.f32 %v1226_v32, %v2893_v34  ;;  %v1562_v47 = vpop.f32.mrf.mxu3 }
 0x2a4   : > { %v1563_v21 = vadd.f32 %v1562_v47, %v1450_v26  ;;  %v1339_v22 = vpop.f32.mrf.mxu1 }
 0x2a5   : > { %v1340_v15 = vadd.f32 %v1339_v22, %v1227_v37 }
 0x2a6   : > { %v1633_v23 = vmax.f32 %v1563_v21, 0.0 }
 0x2a8   : > { %1697 = vst [vmem:[%s2494_s25 + $0x1a8] sm:$0xff] %v1633_v23  ;;  %v1452_v42 = vpop.f32.mrf.mxu2 }
 0x2a9   : > { %v1453_v44 = vadd.f32 %v1452_v42, %v1340_v15 }
 0x2aa   : > { %v1229_v50 = vpop.f32.mrf.mxu0 }
 0x2ab   : > { %v1230_v59 = vadd.f32 %v1229_v50, %v2894_v52  ;;  %v1565_v3 = vpop.f32.mrf.mxu3 }
 0x2ac   : > { %v1566_v62 = vadd.f32 %v1565_v3, %v1453_v44  ;;  %v1342_v63 = vpop.f32.mrf.mxu1 }
 0x2ad   : > { %v1343_v6 = vadd.f32 %v1342_v63, %v1230_v59 }
 0x2ae   : > { %v1635_v9 = vmax.f32 %v1566_v62, 0.0 }
 0x2b0   : > { %1699 = vst [vmem:[%s2494_s25 + $0x1b8] sm:$0xff] %v1635_v9  ;;  %v1455_v0 = vpop.f32.mrf.mxu2 }
 0x2b1   : > { %v1456_v1 = vadd.f32 %v1455_v0, %v1343_v6 }
 0x2b2   : > { %v1232_v10 = vpop.f32.mrf.mxu0 }
 0x2b3   : > { %v1233_v18 = vadd.f32 %v1232_v10, %v2895_v13  ;;  %v1568_v40 = vpop.f32.mrf.mxu3 }
 0x2b4   : > { %v1569_v57 = vadd.f32 %v1568_v40, %v1456_v1  ;;  %v1345_v5 = vpop.f32.mrf.mxu1 }
 0x2b5   : > { %v1346_v33 = vadd.f32 %v1345_v5, %v1233_v18 }
 0x2b6   : > { %v1637_v28 = vmax.f32 %v1569_v57, 0.0 }
 0x2b8   : > { %1701 = vst [vmem:[%s2494_s25 + $0x1c8] sm:$0xff] %v1637_v28  ;;  %v1458_v43 = vpop.f32.mrf.mxu2 }
 0x2b9   : > { %v1459_v24 = vadd.f32 %v1458_v43, %v1346_v33 }
 0x2ba   : > { %v1235_v27 = vpop.f32.mrf.mxu0 }
 0x2bb   : > { %v1236_v17 = vadd.f32 %v1235_v27, %v2896_v31  ;;  %v1571_v35 = vpop.f32.mrf.mxu3 }
 0x2bc   : > { %v1572_v20 = vadd.f32 %v1571_v35, %v1459_v24  ;;  %v1348_v38 = vpop.f32.mrf.mxu1 }
 0x2bd   : > { %v1349_v48 = vadd.f32 %v1348_v38, %v1236_v17 }
 0x2be   : > { %v1639_v4 = vmax.f32 %v1572_v20, 0.0 }
 0x2c0   : > { %1703 = vst [vmem:[%s2494_s25 + $0x1d8] sm:$0xff] %v1639_v4  ;;  %v1461_v46 = vpop.f32.mrf.mxu2 }
 0x2c1   : > { %v1462_v45 = vadd.f32 %v1461_v46, %v1349_v48 }
 0x2c2   : > { %v1238_v54 = vpop.f32.mrf.mxu0 }
 0x2c3   : > { %v1239_v60 = vadd.f32 %v1238_v54, %v2736_v30  ;;  %v1574_v56 = vpop.f32.mrf.mxu3 }
 0x2c4   : > { %v1575_v58 = vadd.f32 %v1574_v56, %v1462_v45  ;;  %v1351_v61 = vpop.f32.mrf.mxu1 }
 0x2c5   : > { %v1352_v36 = vadd.f32 %v1351_v61, %v1239_v60 }
 0x2c6   : > { %v1641_v39 = vmax.f32 %v1575_v58, 0.0 }
 0x2c8   : > { %1705 = vst [vmem:[%s2494_s25 + $0x1e8] sm:$0xff] %v1641_v39  ;;  %v1464_v29 = vpop.f32.mrf.mxu2 }
 0x2c9   : > { %v1465_v51 = vadd.f32 %v1464_v29, %v1352_v36 }
 0x2cb   : > { %v1577_v12 = vpop.f32.mrf.mxu3 }
 0x2cc   : > { %v1578_v30 = vadd.f32 %v1577_v12, %v1465_v51 }
 0x2ce   : > { %v1643_v7 = vmax.f32 %v1578_v30, 0.0 }
 0x2d0   : > { %1707 = vst [vmem:[%s2494_s25 + $0x1f8] sm:$0xff] %v1643_v7 }
 0x2d1   : > { %2118 = shalt.err (!%p2115_p0)
}
 0x2d2   : > { %s2185_s6 = smov 256   ;;  %s2186_s25 = smov 16  }
 0x2d3   : > { %1848 = dma.vmem_to_hbm [thread:$0]  (%p2286_p5), %s1724_s24, 8192, %s1726_s26, %s1709_s28, %s2185_s6, %s2185_s6, %s2186_s25  }
 0x2d4 PF: > { %s1740_s11 = sand.u32 1, %s2157_s12   ;;  %p1859_p3 = pnand %p1827_p11, %p2256_p6 }
 0x2d5   : > { %s1741_s1 = scalar_lea.sflag [#allocation4], %s1740_s11 }
 0x2d6   : > { %p1860_p7 = pneg %p1859_p3 }
 0x2d8   : > { %2152 = dma.done.wait (%p1860_p7), %s1741_s1, 8192  }
 0x2d9   : > { %2154 = vsyncadd (%p1860_p7), %s1741_s1, 4294959104  ;;  %s20_s17 = sadd.s32 1, %s2177_s17   ;;  %s2897_s12 = smov %s2161_s13 }
 0x2da   : > { %p17_p9 = scmp.ge.s32.totalorder %s20_s17, 4   ;;  %s2898_s13 = smov %s2165_s14 }
 0x2db   : > { %s2899_s14 = smov %s2295_s18  ;;  %s2900_s15 = smov %s2173_s16 }
 0x2dc   : > { %s2901_s16 = smov %s2903_s5  ;;  %19 = sbr.rel (!%p17_p9) target bundleno = 9 (0x9), region = 81 }
 0x2e1   :  { %1747 = vsyncpa [#allocation3], 1 }
 0x2e2   :  { %1749 = vsyncpa [#allocation3 + $0x1], 1 }
 0x2e3   :  { %1750 = vsyncpa [#allocation6], 1 }
 0x2e4   :  { %1751 = vsyncpa [#allocation4], 1 }
 0x2e5   :  { %1753 = vsyncpa [#allocation4 + $0x1], 1 }

</bundles_post_ra>
